<compile_context>
chip_gen: v7x
topology: tpu7x:2x2x1
jax: 0.10.0
libtpu: 0.0.40
codegen_flags: <defaults>
</compile_context>

<pallas_src>
import functools
import numpy as np
import jax
import jax.numpy as jnp
from jax.experimental import pallas as pl
from jax.experimental.pallas import tpu as pltpu

INPUT_DIM = 18
HIDDEN_DIM = 32
NUM_LAYERS = 2
OUTPUT_DIM = 18
OUT_PAD = 128  # lane-dense padded output width; sliced back to OUTPUT_DIM in the wrapper


def _lstm_generator_kernel(T, B,
                           x_ref,      # ((T+1)*B, D_in) bf16, last B rows zero-padded
                           wproj_ref,  # (D_in, 8H)      bf16: [Wih0_s | 0]
                           bbig_ref,   # (1, 8H)         f32 : [b0_s | b1_s]
                           wbig_ref,   # (2H, 8H)        bf16: [[Whh0_s, Wih1_s],[0, Whh1_s]]
                           wfc_ref,    # (H, OUT_PAD)    bf16, cols >= OUTPUT_DIM zero
                           bfc_ref,    # (1, OUT_PAD)    f32
                           out_ref):   # (B, OUT_PAD)    f32
    H = HIDDEN_DIM

    # Hoisted layer-0 input projection for all T (+1 pad) steps: ONE MXU push.
    # The bias add also broadcasts the layer-1 bias into the upper 4H lanes of
    # every wave's gate tensor, so no per-wave bias concat is needed.
    xw_all = jnp.dot(x_ref[...], wproj_ref[...],
                     preferred_element_type=jnp.float32) + bbig_ref[...]   # ((T+1)*B, 8H)

    wbig = wbig_ref[...]

    c0 = jnp.zeros((B, H), jnp.float32)
    c1 = jnp.zeros((B, H), jnp.float32)
    h0 = jnp.zeros((B, H), jnp.float32)
    h1 = jnp.zeros((B, H), jnp.float32)

    def half_cell(tg, lo, c_prev):
        # i/f/o columns were pre-scaled by 0.5 in the wrapper, so the single
        # full-width tanh already applied to `tg` covers all four gates:
        # sigmoid(z) = 0.5*(tanh(z/2) + 1)  (free VPU fma), g = tanh(z_g).
        i = 0.5 * (tg[:, lo + 0 * H: lo + 1 * H] + 1.0)
        f = 0.5 * (tg[:, lo + 1 * H: lo + 2 * H] + 1.0)
        g = tg[:, lo + 2 * H: lo + 3 * H]
        o = 0.5 * (tg[:, lo + 3 * H: lo + 4 * H] + 1.0)
        c_new = f * c_prev + i * g
        h_new = o * jnp.tanh(c_new)
        return h_new, c_new

    # Wavefront-fused recurrence: wave w computes layer0 step w AND layer1 step w-1
    # with one (B,2H)@(2H,8H) bf16 dot + one 256-lane tanh.  Serial chain is T+1
    # rounds instead of 2T.  The [h0 | h1] state lives in vregs (lane concat) —
    # no VMEM scratch stores/loads on the critical path.
    for w in range(T + 1):
        g_x = xw_all[w * B:(w + 1) * B, :]               # (B, 8H): [x_w@Wih0+b0 | b1]
        if w == 0:
            gates = g_x                                   # state is all zeros: skip the dot
        else:
            state = jnp.concatenate([h0, h1], axis=1).astype(jnp.bfloat16)   # (B, 2H)
            gates = g_x + jnp.dot(state, wbig, preferred_element_type=jnp.float32)
        tg = jnp.tanh(gates)                              # single EUP push per wave
        if w < T:                                         # layer-0 half valid for w < T
            h0, c0 = half_cell(tg, 0, c0)
        if w >= 1:                                        # layer-1 half valid for w >= 1
            h1, c1 = half_cell(tg, 4 * H, c1)

    # fc(h1[T-1]) — lane-dense (B, OUT_PAD) store; wrapper slices back to OUTPUT_DIM.
    out_ref[...] = (jnp.dot(h1.astype(jnp.bfloat16), wfc_ref[...],
                            preferred_element_type=jnp.float32) + bfc_ref[...])


def generator_forward(x, params):
    """x: (B, T, INPUT_DIM) float32, batch-first like PyTorch.  Returns (B, OUTPUT_DIM)."""
    B, T, D = x.shape
    assert D == INPUT_DIM
    H = HIDDEN_DIM
    (wih0, whh0, b0, wih1, whh1, b1, wfc, bfc) = params

    # --- One-time weight restructuring (XLA side, outside the kernel) ---------------
    # sigmoid-via-tanh: pre-scale the i/f/o gate columns (PyTorch order i,f,g,o) by 0.5.
    gate_scale = jnp.concatenate(
        [jnp.full((1, H), 0.5, jnp.float32), jnp.full((1, H), 0.5, jnp.float32),
         jnp.ones((1, H), jnp.float32), jnp.full((1, H), 0.5, jnp.float32)], axis=1)

    wih0_s, whh0_s, b0_s = wih0 * gate_scale, whh0 * gate_scale, b0 * gate_scale
    wih1_s, whh1_s, b1_s = wih1 * gate_scale, whh1 * gate_scale, b1 * gate_scale

    # Wavefront weight: [h0 | h1] @ [[Whh0, Wih1], [0, Whh1]] -> 8H fused gates.
    wbig = jnp.concatenate(
        [jnp.concatenate([whh0_s, wih1_s], axis=1),
         jnp.concatenate([jnp.zeros((H, 4 * H), jnp.float32), whh1_s], axis=1)],
        axis=0).astype(jnp.bfloat16)                                            # (2H, 8H)

    # Batched input-projection weight [Wih0 | 0]; bias [b0 | b1] broadcasts b1 into
    # the layer-1 gate half of every wave.
    wproj = jnp.concatenate(
        [wih0_s, jnp.zeros((INPUT_DIM, 4 * H), jnp.float32)], axis=1).astype(jnp.bfloat16)
    bbig = jnp.concatenate([b0_s, b1_s], axis=1)                                # (1, 8H) f32

    # fc weights lane-padded to 128 for an unmasked lane-dense output store.
    wfc_p = jnp.concatenate(
        [wfc, jnp.zeros((H, OUT_PAD - OUTPUT_DIM), jnp.float32)], axis=1).astype(jnp.bfloat16)
    bfc_p = jnp.concatenate(
        [bfc, jnp.zeros((1, OUT_PAD - OUTPUT_DIM), jnp.float32)], axis=1)       # (1, 128)

    # Time-major flatten (row = t*B + b) plus one zero pseudo-step so the final,
    # layer-1-only wave reads plain biases.  Feeds a single projection matmul.
    x_tm = jnp.transpose(x, (1, 0, 2)).reshape(T * B, D)
    x_flat = jnp.concatenate([x_tm, jnp.zeros((B, D), x.dtype)],
                             axis=0).astype(jnp.bfloat16)                       # ((T+1)B, D)

    vmem = pl.BlockSpec(memory_space=pltpu.MemorySpace.VMEM)
    kernel = functools.partial(_lstm_generator_kernel, T, B)

    out_padded = pl.pallas_call(
        kernel,
        out_shape=jax.ShapeDtypeStruct((B, OUT_PAD), jnp.float32),
        in_specs=[vmem] * 6,
        out_specs=vmem,
    )(x_flat, wproj, bbig, wbig, wfc_p, bfc_p)
    # TODO(synk): for large batches, add a leading 'parallel' batch grid axis (blocked
    # x/out BlockSpecs, tile sized for v7x's 64 MiB VMEM) so independent per-example
    # recurrences shard across v7x's two TensorCores; keep this gridless single call
    # for small B on single-core v5e/v6e.
    return out_padded[:, :OUTPUT_DIM]


def init_params(key):
    """Deterministic parameter init, PyTorch-LSTM-style shapes (pre-transposed)."""
    k = 1.0 / np.sqrt(HIDDEN_DIM)
    keys = jax.random.split(key, 10)

    def u(k_, shape):
        return jax.random.uniform(k_, shape, jnp.float32, minval=-k, maxval=k)

    # Layer 0: W_ih (4H, D_in), W_hh (4H, H); stored transposed.
    wih0 = u(keys[0], (INPUT_DIM, 4 * HIDDEN_DIM))
    whh0 = u(keys[1], (HIDDEN_DIM, 4 * HIDDEN_DIM))
    b0 = u(keys[2], (1, 4 * HIDDEN_DIM)) + u(keys[3], (1, 4 * HIDDEN_DIM))  # b_ih + b_hh
    # Layer 1: input size is HIDDEN_DIM.
    wih1 = u(keys[4], (HIDDEN_DIM, 4 * HIDDEN_DIM))
    whh1 = u(keys[5], (HIDDEN_DIM, 4 * HIDDEN_DIM))
    b1 = u(keys[6], (1, 4 * HIDDEN_DIM)) + u(keys[7], (1, 4 * HIDDEN_DIM))
    # fc: Linear(HIDDEN_DIM, OUTPUT_DIM): y = h @ W^T + b; store W^T.
    wfc = u(keys[8], (HIDDEN_DIM, OUTPUT_DIM))
    bfc = u(keys[9], (1, OUTPUT_DIM))
    return (wih0, whh0, b0, wih1, whh1, b1, wfc, bfc)


def ref_forward(x, params):
    """Pure-JAX f32 reference mirroring PyTorch LSTM + Linear semantics."""
    (wih0, whh0, b0, wih1, whh1, b1, wfc, bfc) = params
    B, T, _ = x.shape
    H = HIDDEN_DIM

    def step(x_in, h, c, wih, whh, b):
        gates = x_in @ wih + h @ whh + b
        i = jax.nn.sigmoid(gates[:, 0 * H:1 * H])
        f = jax.nn.sigmoid(gates[:, 1 * H:2 * H])
        g = jnp.tanh(gates[:, 2 * H:3 * H])
        o = jax.nn.sigmoid(gates[:, 3 * H:4 * H])
        c_new = f * c + i * g
        h_new = o * jnp.tanh(c_new)
        return h_new, c_new

    h0 = jnp.zeros((B, H), jnp.float32)
    c0 = jnp.zeros((B, H), jnp.float32)
    h1 = jnp.zeros((B, H), jnp.float32)
    c1 = jnp.zeros((B, H), jnp.float32)
    for t in range(T):
        x_t = x[:, t, :]
        h0, c0 = step(x_t, h0, c0, wih0, whh0, b0)
        h1, c1 = step(h0, h1, c1, wih1, whh1, b1)
    return h1 @ wfc + bfc


if __name__ == "__main__":
    key = jax.random.PRNGKey(0)
    k_x, k_p = jax.random.split(key)

    B, T = 2, 8  # small shapes; feature dims fixed by the module (18 -> 32 -> 18)
    x = jax.random.normal(k_x, (B, T, INPUT_DIM), jnp.float32)
    params = init_params(k_p)

    out = generator_forward(x, params)
    out = jax.block_until_ready(out)

    ref = ref_forward(x, params)
    assert out.shape == (B, OUTPUT_DIM)
    # bf16 MXU operands (per perf review) shift a few ULPs vs the pure-f32 reference;
    # 2e-2 is the standard bf16-compute tolerance at these magnitudes.
    np.testing.assert_allclose(np.asarray(out), np.asarray(ref), rtol=2e-2, atol=2e-2)

    print("KERNEL_OK")
</pallas_src>

<mosaic_0001>
module attributes {stable_mosaic.version = 11 : i64} {
  func.func @_lstm_generator_kernel(%arg0: memref<18x18xbf16, #tpu.memory_space<vmem>>, %arg1: memref<18x256xbf16, #tpu.memory_space<vmem>>, %arg2: memref<1x256xf32, #tpu.memory_space<vmem>>, %arg3: memref<64x256xbf16, #tpu.memory_space<vmem>>, %arg4: memref<32x128xbf16, #tpu.memory_space<vmem>>, %arg5: memref<1x128xf32, #tpu.memory_space<vmem>>, %arg6: memref<2x128xf32, #tpu.memory_space<vmem>>) attributes {dimension_semantics = [], scalar_prefetch = 0 : i64, scratch_operands = 0 : i64, tpu.core_type = #tpu.core_type<tc>} {
    %c0 = arith.constant 0 : index
    %c0_0 = arith.constant 0 : index
    %0 = vector.load %arg0[%c0, %c0_0] : memref<18x18xbf16, #tpu.memory_space<vmem>>, vector<18x18xbf16>
    %c0_1 = arith.constant 0 : index
    %c0_2 = arith.constant 0 : index
    %1 = vector.load %arg1[%c0_1, %c0_2] : memref<18x256xbf16, #tpu.memory_space<vmem>>, vector<18x256xbf16>
    %cst = arith.constant dense<0.000000e+00> : vector<18x256xf32>
    %2 = tpu.matmul %0, %1, %cst {dimension_numbers = #tpu.dot_dimension_numbers<[1], [0], [0], [1], [0, 0, 1, 1], [], []>} : vector<18x18xbf16>, vector<18x256xbf16>, vector<18x256xf32> -> vector<18x256xf32>
    %c0_3 = arith.constant 0 : index
    %c0_4 = arith.constant 0 : index
    %3 = vector.load %arg2[%c0_3, %c0_4] : memref<1x256xf32, #tpu.memory_space<vmem>>, vector<1x256xf32>
    %4 = vector.broadcast %3 : vector<1x256xf32> to vector<18x256xf32>
    %5 = arith.addf %2, %4 : vector<18x256xf32>
    %c0_5 = arith.constant 0 : index
    %c0_6 = arith.constant 0 : index
    %6 = vector.load %arg3[%c0_5, %c0_6] : memref<64x256xbf16, #tpu.memory_space<vmem>>, vector<64x256xbf16>
    %cst_7 = arith.constant 0.000000e+00 : f32
    %7 = vector.broadcast %cst_7 : f32 to vector<2x32xf32>
    %cst_8 = arith.constant 0.000000e+00 : f32
    %8 = vector.broadcast %cst_8 : f32 to vector<2x32xf32>
    %cst_9 = arith.constant 0.000000e+00 : f32
    %9 = vector.broadcast %cst_9 : f32 to vector<2x32xf32>
    %10 = vector.extract_strided_slice %5 {offsets = [0, 0], sizes = [2, 256], strides = [1, 1]} : vector<18x256xf32> to vector<2x256xf32>
    %11 = math.tanh %10 : vector<2x256xf32>
    %12 = vector.extract_strided_slice %11 {offsets = [0, 0], sizes = [2, 32], strides = [1, 1]} : vector<2x256xf32> to vector<2x32xf32>
    %cst_10 = arith.constant 1.000000e+00 : f32
    %13 = vector.broadcast %cst_10 : f32 to vector<2x32xf32>
    %14 = arith.addf %12, %13 : vector<2x32xf32>
    %cst_11 = arith.constant 5.000000e-01 : f32
    %15 = vector.broadcast %cst_11 : f32 to vector<2x32xf32>
    %16 = arith.mulf %15, %14 : vector<2x32xf32>
    %17 = vector.extract_strided_slice %11 {offsets = [0, 32], sizes = [2, 32], strides = [1, 1]} : vector<2x256xf32> to vector<2x32xf32>
    %cst_12 = arith.constant 1.000000e+00 : f32
    %18 = vector.broadcast %cst_12 : f32 to vector<2x32xf32>
    %19 = arith.addf %17, %18 : vector<2x32xf32>
    %cst_13 = arith.constant 5.000000e-01 : f32
    %20 = vector.broadcast %cst_13 : f32 to vector<2x32xf32>
    %21 = arith.mulf %20, %19 : vector<2x32xf32>
    %22 = vector.extract_strided_slice %11 {offsets = [0, 64], sizes = [2, 32], strides = [1, 1]} : vector<2x256xf32> to vector<2x32xf32>
    %23 = vector.extract_strided_slice %11 {offsets = [0, 96], sizes = [2, 32], strides = [1, 1]} : vector<2x256xf32> to vector<2x32xf32>
    %cst_14 = arith.constant 1.000000e+00 : f32
    %24 = vector.broadcast %cst_14 : f32 to vector<2x32xf32>
    %25 = arith.addf %23, %24 : vector<2x32xf32>
    %cst_15 = arith.constant 5.000000e-01 : f32
    %26 = vector.broadcast %cst_15 : f32 to vector<2x32xf32>
    %27 = arith.mulf %26, %25 : vector<2x32xf32>
    %28 = arith.mulf %21, %7 : vector<2x32xf32>
    %29 = arith.mulf %16, %22 : vector<2x32xf32>
    %30 = arith.addf %28, %29 : vector<2x32xf32>
    %31 = math.tanh %30 : vector<2x32xf32>
    %32 = arith.mulf %27, %31 : vector<2x32xf32>
    %33 = vector.extract_strided_slice %5 {offsets = [2, 0], sizes = [2, 256], strides = [1, 1]} : vector<18x256xf32> to vector<2x256xf32>
    %34 = tpu.concatenate %32, %9 in 1 : vector<2x32xf32>, vector<2x32xf32> -> vector<2x64xf32>
    %35 = arith.truncf %34 : vector<2x64xf32> to vector<2x64xbf16>
    %cst_16 = arith.constant dense<0.000000e+00> : vector<2x256xf32>
    %36 = tpu.matmul %35, %6, %cst_16 {dimension_numbers = #tpu.dot_dimension_numbers<[1], [0], [0], [1], [0, 0, 1, 1], [], []>} : vector<2x64xbf16>, vector<64x256xbf16>, vector<2x256xf32> -> vector<2x256xf32>
    %37 = arith.addf %33, %36 : vector<2x256xf32>
    %38 = math.tanh %37 : vector<2x256xf32>
    %39 = vector.extract_strided_slice %38 {offsets = [0, 0], sizes = [2, 32], strides = [1, 1]} : vector<2x256xf32> to vector<2x32xf32>
    %cst_17 = arith.constant 1.000000e+00 : f32
    %40 = vector.broadcast %cst_17 : f32 to vector<2x32xf32>
    %41 = arith.addf %39, %40 : vector<2x32xf32>
    %cst_18 = arith.constant 5.000000e-01 : f32
    %42 = vector.broadcast %cst_18 : f32 to vector<2x32xf32>
    %43 = arith.mulf %42, %41 : vector<2x32xf32>
    %44 = vector.extract_strided_slice %38 {offsets = [0, 32], sizes = [2, 32], strides = [1, 1]} : vector<2x256xf32> to vector<2x32xf32>
    %cst_19 = arith.constant 1.000000e+00 : f32
    %45 = vector.broadcast %cst_19 : f32 to vector<2x32xf32>
    %46 = arith.addf %44, %45 : vector<2x32xf32>
    %cst_20 = arith.constant 5.000000e-01 : f32
    %47 = vector.broadcast %cst_20 : f32 to vector<2x32xf32>
    %48 = arith.mulf %47, %46 : vector<2x32xf32>
    %49 = vector.extract_strided_slice %38 {offsets = [0, 64], sizes = [2, 32], strides = [1, 1]} : vector<2x256xf32> to vector<2x32xf32>
    %50 = vector.extract_strided_slice %38 {offsets = [0, 96], sizes = [2, 32], strides = [1, 1]} : vector<2x256xf32> to vector<2x32xf32>
    %cst_21 = arith.constant 1.000000e+00 : f32
    %51 = vector.broadcast %cst_21 : f32 to vector<2x32xf32>
    %52 = arith.addf %50, %51 : vector<2x32xf32>
    %cst_22 = arith.constant 5.000000e-01 : f32
    %53 = vector.broadcast %cst_22 : f32 to vector<2x32xf32>
    %54 = arith.mulf %53, %52 : vector<2x32xf32>
    %55 = arith.mulf %48, %30 : vector<2x32xf32>
    %56 = arith.mulf %43, %49 : vector<2x32xf32>
    %57 = arith.addf %55, %56 : vector<2x32xf32>
    %58 = math.tanh %57 : vector<2x32xf32>
    %59 = arith.mulf %54, %58 : vector<2x32xf32>
    %60 = vector.extract_strided_slice %38 {offsets = [0, 128], sizes = [2, 32], strides = [1, 1]} : vector<2x256xf32> to vector<2x32xf32>
    %cst_23 = arith.constant 1.000000e+00 : f32
    %61 = vector.broadcast %cst_23 : f32 to vector<2x32xf32>
    %62 = arith.addf %60, %61 : vector<2x32xf32>
    %cst_24 = arith.constant 5.000000e-01 : f32
    %63 = vector.broadcast %cst_24 : f32 to vector<2x32xf32>
    %64 = arith.mulf %63, %62 : vector<2x32xf32>
    %65 = vector.extract_strided_slice %38 {offsets = [0, 160], sizes = [2, 32], strides = [1, 1]} : vector<2x256xf32> to vector<2x32xf32>
    %cst_25 = arith.constant 1.000000e+00 : f32
    %66 = vector.broadcast %cst_25 : f32 to vector<2x32xf32>
    %67 = arith.addf %65, %66 : vector<2x32xf32>
    %cst_26 = arith.constant 5.000000e-01 : f32
    %68 = vector.broadcast %cst_26 : f32 to vector<2x32xf32>
    %69 = arith.mulf %68, %67 : vector<2x32xf32>
    %70 = vector.extract_strided_slice %38 {offsets = [0, 192], sizes = [2, 32], strides = [1, 1]} : vector<2x256xf32> to vector<2x32xf32>
    %71 = vector.extract_strided_slice %38 {offsets = [0, 224], sizes = [2, 32], strides = [1, 1]} : vector<2x256xf32> to vector<2x32xf32>
    %cst_27 = arith.constant 1.000000e+00 : f32
    %72 = vector.broadcast %cst_27 : f32 to vector<2x32xf32>
    %73 = arith.addf %71, %72 : vector<2x32xf32>
    %cst_28 = arith.constant 5.000000e-01 : f32
    %74 = vector.broadcast %cst_28 : f32 to vector<2x32xf32>
    %75 = arith.mulf %74, %73 : vector<2x32xf32>
    %76 = arith.mulf %69, %8 : vector<2x32xf32>
    %77 = arith.mulf %64, %70 : vector<2x32xf32>
    %78 = arith.addf %76, %77 : vector<2x32xf32>
    %79 = math.tanh %78 : vector<2x32xf32>
    %80 = arith.mulf %75, %79 : vector<2x32xf32>
    %81 = vector.extract_strided_slice %5 {offsets = [4, 0], sizes = [2, 256], strides = [1, 1]} : vector<18x256xf32> to vector<2x256xf32>
    %82 = tpu.concatenate %59, %80 in 1 : vector<2x32xf32>, vector<2x32xf32> -> vector<2x64xf32>
    %83 = arith.truncf %82 : vector<2x64xf32> to vector<2x64xbf16>
    %cst_29 = arith.constant dense<0.000000e+00> : vector<2x256xf32>
    %84 = tpu.matmul %83, %6, %cst_29 {dimension_numbers = #tpu.dot_dimension_numbers<[1], [0], [0], [1], [0, 0, 1, 1], [], []>} : vector<2x64xbf16>, vector<64x256xbf16>, vector<2x256xf32> -> vector<2x256xf32>
    %85 = arith.addf %81, %84 : vector<2x256xf32>
    %86 = math.tanh %85 : vector<2x256xf32>
    %87 = vector.extract_strided_slice %86 {offsets = [0, 0], sizes = [2, 32], strides = [1, 1]} : vector<2x256xf32> to vector<2x32xf32>
    %cst_30 = arith.constant 1.000000e+00 : f32
    %88 = vector.broadcast %cst_30 : f32 to vector<2x32xf32>
    %89 = arith.addf %87, %88 : vector<2x32xf32>
    %cst_31 = arith.constant 5.000000e-01 : f32
    %90 = vector.broadcast %cst_31 : f32 to vector<2x32xf32>
    %91 = arith.mulf %90, %89 : vector<2x32xf32>
    %92 = vector.extract_strided_slice %86 {offsets = [0, 32], sizes = [2, 32], strides = [1, 1]} : vector<2x256xf32> to vector<2x32xf32>
    %cst_32 = arith.constant 1.000000e+00 : f32
    %93 = vector.broadcast %cst_32 : f32 to vector<2x32xf32>
    %94 = arith.addf %92, %93 : vector<2x32xf32>
    %cst_33 = arith.constant 5.000000e-01 : f32
    %95 = vector.broadcast %cst_33 : f32 to vector<2x32xf32>
    %96 = arith.mulf %95, %94 : vector<2x32xf32>
    %97 = vector.extract_strided_slice %86 {offsets = [0, 64], sizes = [2, 32], strides = [1, 1]} : vector<2x256xf32> to vector<2x32xf32>
    %98 = vector.extract_strided_slice %86 {offsets = [0, 96], sizes = [2, 32], strides = [1, 1]} : vector<2x256xf32> to vector<2x32xf32>
    %cst_34 = arith.constant 1.000000e+00 : f32
    %99 = vector.broadcast %cst_34 : f32 to vector<2x32xf32>
    %100 = arith.addf %98, %99 : vector<2x32xf32>
    %cst_35 = arith.constant 5.000000e-01 : f32
    %101 = vector.broadcast %cst_35 : f32 to vector<2x32xf32>
    %102 = arith.mulf %101, %100 : vector<2x32xf32>
    %103 = arith.mulf %96, %57 : vector<2x32xf32>
    %104 = arith.mulf %91, %97 : vector<2x32xf32>
    %105 = arith.addf %103, %104 : vector<2x32xf32>
    %106 = math.tanh %105 : vector<2x32xf32>
    %107 = arith.mulf %102, %106 : vector<2x32xf32>
    %108 = vector.extract_strided_slice %86 {offsets = [0, 128], sizes = [2, 32], strides = [1, 1]} : vector<2x256xf32> to vector<2x32xf32>
    %cst_36 = arith.constant 1.000000e+00 : f32
    %109 = vector.broadcast %cst_36 : f32 to vector<2x32xf32>
    %110 = arith.addf %108, %109 : vector<2x32xf32>
    %cst_37 = arith.constant 5.000000e-01 : f32
    %111 = vector.broadcast %cst_37 : f32 to vector<2x32xf32>
    %112 = arith.mulf %111, %110 : vector<2x32xf32>
    %113 = vector.extract_strided_slice %86 {offsets = [0, 160], sizes = [2, 32], strides = [1, 1]} : vector<2x256xf32> to vector<2x32xf32>
    %cst_38 = arith.constant 1.000000e+00 : f32
    %114 = vector.broadcast %cst_38 : f32 to vector<2x32xf32>
    %115 = arith.addf %113, %114 : vector<2x32xf32>
    %cst_39 = arith.constant 5.000000e-01 : f32
    %116 = vector.broadcast %cst_39 : f32 to vector<2x32xf32>
    %117 = arith.mulf %116, %115 : vector<2x32xf32>
    %118 = vector.extract_strided_slice %86 {offsets = [0, 192], sizes = [2, 32], strides = [1, 1]} : vector<2x256xf32> to vector<2x32xf32>
    %119 = vector.extract_strided_slice %86 {offsets = [0, 224], sizes = [2, 32], strides = [1, 1]} : vector<2x256xf32> to vector<2x32xf32>
    %cst_40 = arith.constant 1.000000e+00 : f32
    %120 = vector.broadcast %cst_40 : f32 to vector<2x32xf32>
    %121 = arith.addf %119, %120 : vector<2x32xf32>
    %cst_41 = arith.constant 5.000000e-01 : f32
    %122 = vector.broadcast %cst_41 : f32 to vector<2x32xf32>
    %123 = arith.mulf %122, %121 : vector<2x32xf32>
    %124 = arith.mulf %117, %78 : vector<2x32xf32>
    %125 = arith.mulf %112, %118 : vector<2x32xf32>
    %126 = arith.addf %124, %125 : vector<2x32xf32>
    %127 = math.tanh %126 : vector<2x32xf32>
    %128 = arith.mulf %123, %127 : vector<2x32xf32>
    %129 = vector.extract_strided_slice %5 {offsets = [6, 0], sizes = [2, 256], strides = [1, 1]} : vector<18x256xf32> to vector<2x256xf32>
    %130 = tpu.concatenate %107, %128 in 1 : vector<2x32xf32>, vector<2x32xf32> -> vector<2x64xf32>
    %131 = arith.truncf %130 : vector<2x64xf32> to vector<2x64xbf16>
    %cst_42 = arith.constant dense<0.000000e+00> : vector<2x256xf32>
    %132 = tpu.matmul %131, %6, %cst_42 {dimension_numbers = #tpu.dot_dimension_numbers<[1], [0], [0], [1], [0, 0, 1, 1], [], []>} : vector<2x64xbf16>, vector<64x256xbf16>, vector<2x256xf32> -> vector<2x256xf32>
    %133 = arith.addf %129, %132 : vector<2x256xf32>
    %134 = math.tanh %133 : vector<2x256xf32>
    %135 = vector.extract_strided_slice %134 {offsets = [0, 0], sizes = [2, 32], strides = [1, 1]} : vector<2x256xf32> to vector<2x32xf32>
    %cst_43 = arith.constant 1.000000e+00 : f32
    %136 = vector.broadcast %cst_43 : f32 to vector<2x32xf32>
    %137 = arith.addf %135, %136 : vector<2x32xf32>
    %cst_44 = arith.constant 5.000000e-01 : f32
    %138 = vector.broadcast %cst_44 : f32 to vector<2x32xf32>
    %139 = arith.mulf %138, %137 : vector<2x32xf32>
    %140 = vector.extract_strided_slice %134 {offsets = [0, 32], sizes = [2, 32], strides = [1, 1]} : vector<2x256xf32> to vector<2x32xf32>
    %cst_45 = arith.constant 1.000000e+00 : f32
    %141 = vector.broadcast %cst_45 : f32 to vector<2x32xf32>
    %142 = arith.addf %140, %141 : vector<2x32xf32>
    %cst_46 = arith.constant 5.000000e-01 : f32
    %143 = vector.broadcast %cst_46 : f32 to vector<2x32xf32>
    %144 = arith.mulf %143, %142 : vector<2x32xf32>
    %145 = vector.extract_strided_slice %134 {offsets = [0, 64], sizes = [2, 32], strides = [1, 1]} : vector<2x256xf32> to vector<2x32xf32>
    %146 = vector.extract_strided_slice %134 {offsets = [0, 96], sizes = [2, 32], strides = [1, 1]} : vector<2x256xf32> to vector<2x32xf32>
    %cst_47 = arith.constant 1.000000e+00 : f32
    %147 = vector.broadcast %cst_47 : f32 to vector<2x32xf32>
    %148 = arith.addf %146, %147 : vector<2x32xf32>
    %cst_48 = arith.constant 5.000000e-01 : f32
    %149 = vector.broadcast %cst_48 : f32 to vector<2x32xf32>
    %150 = arith.mulf %149, %148 : vector<2x32xf32>
    %151 = arith.mulf %144, %105 : vector<2x32xf32>
    %152 = arith.mulf %139, %145 : vector<2x32xf32>
    %153 = arith.addf %151, %152 : vector<2x32xf32>
    %154 = math.tanh %153 : vector<2x32xf32>
    %155 = arith.mulf %150, %154 : vector<2x32xf32>
    %156 = vector.extract_strided_slice %134 {offsets = [0, 128], sizes = [2, 32], strides = [1, 1]} : vector<2x256xf32> to vector<2x32xf32>
    %cst_49 = arith.constant 1.000000e+00 : f32
    %157 = vector.broadcast %cst_49 : f32 to vector<2x32xf32>
    %158 = arith.addf %156, %157 : vector<2x32xf32>
    %cst_50 = arith.constant 5.000000e-01 : f32
    %159 = vector.broadcast %cst_50 : f32 to vector<2x32xf32>
    %160 = arith.mulf %159, %158 : vector<2x32xf32>
    %161 = vector.extract_strided_slice %134 {offsets = [0, 160], sizes = [2, 32], strides = [1, 1]} : vector<2x256xf32> to vector<2x32xf32>
    %cst_51 = arith.constant 1.000000e+00 : f32
    %162 = vector.broadcast %cst_51 : f32 to vector<2x32xf32>
    %163 = arith.addf %161, %162 : vector<2x32xf32>
    %cst_52 = arith.constant 5.000000e-01 : f32
    %164 = vector.broadcast %cst_52 : f32 to vector<2x32xf32>
    %165 = arith.mulf %164, %163 : vector<2x32xf32>
    %166 = vector.extract_strided_slice %134 {offsets = [0, 192], sizes = [2, 32], strides = [1, 1]} : vector<2x256xf32> to vector<2x32xf32>
    %167 = vector.extract_strided_slice %134 {offsets = [0, 224], sizes = [2, 32], strides = [1, 1]} : vector<2x256xf32> to vector<2x32xf32>
    %cst_53 = arith.constant 1.000000e+00 : f32
    %168 = vector.broadcast %cst_53 : f32 to vector<2x32xf32>
    %169 = arith.addf %167, %168 : vector<2x32xf32>
    %cst_54 = arith.constant 5.000000e-01 : f32
    %170 = vector.broadcast %cst_54 : f32 to vector<2x32xf32>
    %171 = arith.mulf %170, %169 : vector<2x32xf32>
    %172 = arith.mulf %165, %126 : vector<2x32xf32>
    %173 = arith.mulf %160, %166 : vector<2x32xf32>
    %174 = arith.addf %172, %173 : vector<2x32xf32>
    %175 = math.tanh %174 : vector<2x32xf32>
    %176 = arith.mulf %171, %175 : vector<2x32xf32>
    %177 = vector.extract_strided_slice %5 {offsets = [8, 0], sizes = [2, 256], strides = [1, 1]} : vector<18x256xf32> to vector<2x256xf32>
    %178 = tpu.concatenate %155, %176 in 1 : vector<2x32xf32>, vector<2x32xf32> -> vector<2x64xf32>
    %179 = arith.truncf %178 : vector<2x64xf32> to vector<2x64xbf16>
    %cst_55 = arith.constant dense<0.000000e+00> : vector<2x256xf32>
    %180 = tpu.matmul %179, %6, %cst_55 {dimension_numbers = #tpu.dot_dimension_numbers<[1], [0], [0], [1], [0, 0, 1, 1], [], []>} : vector<2x64xbf16>, vector<64x256xbf16>, vector<2x256xf32> -> vector<2x256xf32>
    %181 = arith.addf %177, %180 : vector<2x256xf32>
    %182 = math.tanh %181 : vector<2x256xf32>
    %183 = vector.extract_strided_slice %182 {offsets = [0, 0], sizes = [2, 32], strides = [1, 1]} : vector<2x256xf32> to vector<2x32xf32>
    %cst_56 = arith.constant 1.000000e+00 : f32
    %184 = vector.broadcast %cst_56 : f32 to vector<2x32xf32>
    %185 = arith.addf %183, %184 : vector<2x32xf32>
    %cst_57 = arith.constant 5.000000e-01 : f32
    %186 = vector.broadcast %cst_57 : f32 to vector<2x32xf32>
    %187 = arith.mulf %186, %185 : vector<2x32xf32>
    %188 = vector.extract_strided_slice %182 {offsets = [0, 32], sizes = [2, 32], strides = [1, 1]} : vector<2x256xf32> to vector<2x32xf32>
    %cst_58 = arith.constant 1.000000e+00 : f32
    %189 = vector.broadcast %cst_58 : f32 to vector<2x32xf32>
    %190 = arith.addf %188, %189 : vector<2x32xf32>
    %cst_59 = arith.constant 5.000000e-01 : f32
    %191 = vector.broadcast %cst_59 : f32 to vector<2x32xf32>
    %192 = arith.mulf %191, %190 : vector<2x32xf32>
    %193 = vector.extract_strided_slice %182 {offsets = [0, 64], sizes = [2, 32], strides = [1, 1]} : vector<2x256xf32> to vector<2x32xf32>
    %194 = vector.extract_strided_slice %182 {offsets = [0, 96], sizes = [2, 32], strides = [1, 1]} : vector<2x256xf32> to vector<2x32xf32>
    %cst_60 = arith.constant 1.000000e+00 : f32
    %195 = vector.broadcast %cst_60 : f32 to vector<2x32xf32>
    %196 = arith.addf %194, %195 : vector<2x32xf32>
    %cst_61 = arith.constant 5.000000e-01 : f32
    %197 = vector.broadcast %cst_61 : f32 to vector<2x32xf32>
    %198 = arith.mulf %197, %196 : vector<2x32xf32>
    %199 = arith.mulf %192, %153 : vector<2x32xf32>
    %200 = arith.mulf %187, %193 : vector<2x32xf32>
    %201 = arith.addf %199, %200 : vector<2x32xf32>
    %202 = math.tanh %201 : vector<2x32xf32>
    %203 = arith.mulf %198, %202 : vector<2x32xf32>
    %204 = vector.extract_strided_slice %182 {offsets = [0, 128], sizes = [2, 32], strides = [1, 1]} : vector<2x256xf32> to vector<2x32xf32>
    %cst_62 = arith.constant 1.000000e+00 : f32
    %205 = vector.broadcast %cst_62 : f32 to vector<2x32xf32>
    %206 = arith.addf %204, %205 : vector<2x32xf32>
    %cst_63 = arith.constant 5.000000e-01 : f32
    %207 = vector.broadcast %cst_63 : f32 to vector<2x32xf32>
    %208 = arith.mulf %207, %206 : vector<2x32xf32>
    %209 = vector.extract_strided_slice %182 {offsets = [0, 160], sizes = [2, 32], strides = [1, 1]} : vector<2x256xf32> to vector<2x32xf32>
    %cst_64 = arith.constant 1.000000e+00 : f32
    %210 = vector.broadcast %cst_64 : f32 to vector<2x32xf32>
    %211 = arith.addf %209, %210 : vector<2x32xf32>
    %cst_65 = arith.constant 5.000000e-01 : f32
    %212 = vector.broadcast %cst_65 : f32 to vector<2x32xf32>
    %213 = arith.mulf %212, %211 : vector<2x32xf32>
    %214 = vector.extract_strided_slice %182 {offsets = [0, 192], sizes = [2, 32], strides = [1, 1]} : vector<2x256xf32> to vector<2x32xf32>
    %215 = vector.extract_strided_slice %182 {offsets = [0, 224], sizes = [2, 32], strides = [1, 1]} : vector<2x256xf32> to vector<2x32xf32>
    %cst_66 = arith.constant 1.000000e+00 : f32
    %216 = vector.broadcast %cst_66 : f32 to vector<2x32xf32>
    %217 = arith.addf %215, %216 : vector<2x32xf32>
    %cst_67 = arith.constant 5.000000e-01 : f32
    %218 = vector.broadcast %cst_67 : f32 to vector<2x32xf32>
    %219 = arith.mulf %218, %217 : vector<2x32xf32>
    %220 = arith.mulf %213, %174 : vector<2x32xf32>
    %221 = arith.mulf %208, %214 : vector<2x32xf32>
    %222 = arith.addf %220, %221 : vector<2x32xf32>
    %223 = math.tanh %222 : vector<2x32xf32>
    %224 = arith.mulf %219, %223 : vector<2x32xf32>
    %225 = vector.extract_strided_slice %5 {offsets = [10, 0], sizes = [2, 256], strides = [1, 1]} : vector<18x256xf32> to vector<2x256xf32>
    %226 = tpu.concatenate %203, %224 in 1 : vector<2x32xf32>, vector<2x32xf32> -> vector<2x64xf32>
    %227 = arith.truncf %226 : vector<2x64xf32> to vector<2x64xbf16>
    %cst_68 = arith.constant dense<0.000000e+00> : vector<2x256xf32>
    %228 = tpu.matmul %227, %6, %cst_68 {dimension_numbers = #tpu.dot_dimension_numbers<[1], [0], [0], [1], [0, 0, 1, 1], [], []>} : vector<2x64xbf16>, vector<64x256xbf16>, vector<2x256xf32> -> vector<2x256xf32>
    %229 = arith.addf %225, %228 : vector<2x256xf32>
    %230 = math.tanh %229 : vector<2x256xf32>
    %231 = vector.extract_strided_slice %230 {offsets = [0, 0], sizes = [2, 32], strides = [1, 1]} : vector<2x256xf32> to vector<2x32xf32>
    %cst_69 = arith.constant 1.000000e+00 : f32
    %232 = vector.broadcast %cst_69 : f32 to vector<2x32xf32>
    %233 = arith.addf %231, %232 : vector<2x32xf32>
    %cst_70 = arith.constant 5.000000e-01 : f32
    %234 = vector.broadcast %cst_70 : f32 to vector<2x32xf32>
    %235 = arith.mulf %234, %233 : vector<2x32xf32>
    %236 = vector.extract_strided_slice %230 {offsets = [0, 32], sizes = [2, 32], strides = [1, 1]} : vector<2x256xf32> to vector<2x32xf32>
    %cst_71 = arith.constant 1.000000e+00 : f32
    %237 = vector.broadcast %cst_71 : f32 to vector<2x32xf32>
    %238 = arith.addf %236, %237 : vector<2x32xf32>
    %cst_72 = arith.constant 5.000000e-01 : f32
    %239 = vector.broadcast %cst_72 : f32 to vector<2x32xf32>
    %240 = arith.mulf %239, %238 : vector<2x32xf32>
    %241 = vector.extract_strided_slice %230 {offsets = [0, 64], sizes = [2, 32], strides = [1, 1]} : vector<2x256xf32> to vector<2x32xf32>
    %242 = vector.extract_strided_slice %230 {offsets = [0, 96], sizes = [2, 32], strides = [1, 1]} : vector<2x256xf32> to vector<2x32xf32>
    %cst_73 = arith.constant 1.000000e+00 : f32
    %243 = vector.broadcast %cst_73 : f32 to vector<2x32xf32>
    %244 = arith.addf %242, %243 : vector<2x32xf32>
    %cst_74 = arith.constant 5.000000e-01 : f32
    %245 = vector.broadcast %cst_74 : f32 to vector<2x32xf32>
    %246 = arith.mulf %245, %244 : vector<2x32xf32>
    %247 = arith.mulf %240, %201 : vector<2x32xf32>
    %248 = arith.mulf %235, %241 : vector<2x32xf32>
    %249 = arith.addf %247, %248 : vector<2x32xf32>
    %250 = math.tanh %249 : vector<2x32xf32>
    %251 = arith.mulf %246, %250 : vector<2x32xf32>
    %252 = vector.extract_strided_slice %230 {offsets = [0, 128], sizes = [2, 32], strides = [1, 1]} : vector<2x256xf32> to vector<2x32xf32>
    %cst_75 = arith.constant 1.000000e+00 : f32
    %253 = vector.broadcast %cst_75 : f32 to vector<2x32xf32>
    %254 = arith.addf %252, %253 : vector<2x32xf32>
    %cst_76 = arith.constant 5.000000e-01 : f32
    %255 = vector.broadcast %cst_76 : f32 to vector<2x32xf32>
    %256 = arith.mulf %255, %254 : vector<2x32xf32>
    %257 = vector.extract_strided_slice %230 {offsets = [0, 160], sizes = [2, 32], strides = [1, 1]} : vector<2x256xf32> to vector<2x32xf32>
    %cst_77 = arith.constant 1.000000e+00 : f32
    %258 = vector.broadcast %cst_77 : f32 to vector<2x32xf32>
    %259 = arith.addf %257, %258 : vector<2x32xf32>
    %cst_78 = arith.constant 5.000000e-01 : f32
    %260 = vector.broadcast %cst_78 : f32 to vector<2x32xf32>
    %261 = arith.mulf %260, %259 : vector<2x32xf32>
    %262 = vector.extract_strided_slice %230 {offsets = [0, 192], sizes = [2, 32], strides = [1, 1]} : vector<2x256xf32> to vector<2x32xf32>
    %263 = vector.extract_strided_slice %230 {offsets = [0, 224], sizes = [2, 32], strides = [1, 1]} : vector<2x256xf32> to vector<2x32xf32>
    %cst_79 = arith.constant 1.000000e+00 : f32
    %264 = vector.broadcast %cst_79 : f32 to vector<2x32xf32>
    %265 = arith.addf %263, %264 : vector<2x32xf32>
    %cst_80 = arith.constant 5.000000e-01 : f32
    %266 = vector.broadcast %cst_80 : f32 to vector<2x32xf32>
    %267 = arith.mulf %266, %265 : vector<2x32xf32>
    %268 = arith.mulf %261, %222 : vector<2x32xf32>
    %269 = arith.mulf %256, %262 : vector<2x32xf32>
    %270 = arith.addf %268, %269 : vector<2x32xf32>
    %271 = math.tanh %270 : vector<2x32xf32>
    %272 = arith.mulf %267, %271 : vector<2x32xf32>
    %273 = vector.extract_strided_slice %5 {offsets = [12, 0], sizes = [2, 256], strides = [1, 1]} : vector<18x256xf32> to vector<2x256xf32>
    %274 = tpu.concatenate %251, %272 in 1 : vector<2x32xf32>, vector<2x32xf32> -> vector<2x64xf32>
    %275 = arith.truncf %274 : vector<2x64xf32> to vector<2x64xbf16>
    %cst_81 = arith.constant dense<0.000000e+00> : vector<2x256xf32>
    %276 = tpu.matmul %275, %6, %cst_81 {dimension_numbers = #tpu.dot_dimension_numbers<[1], [0], [0], [1], [0, 0, 1, 1], [], []>} : vector<2x64xbf16>, vector<64x256xbf16>, vector<2x256xf32> -> vector<2x256xf32>
    %277 = arith.addf %273, %276 : vector<2x256xf32>
    %278 = math.tanh %277 : vector<2x256xf32>
    %279 = vector.extract_strided_slice %278 {offsets = [0, 0], sizes = [2, 32], strides = [1, 1]} : vector<2x256xf32> to vector<2x32xf32>
    %cst_82 = arith.constant 1.000000e+00 : f32
    %280 = vector.broadcast %cst_82 : f32 to vector<2x32xf32>
    %281 = arith.addf %279, %280 : vector<2x32xf32>
    %cst_83 = arith.constant 5.000000e-01 : f32
    %282 = vector.broadcast %cst_83 : f32 to vector<2x32xf32>
    %283 = arith.mulf %282, %281 : vector<2x32xf32>
    %284 = vector.extract_strided_slice %278 {offsets = [0, 32], sizes = [2, 32], strides = [1, 1]} : vector<2x256xf32> to vector<2x32xf32>
    %cst_84 = arith.constant 1.000000e+00 : f32
    %285 = vector.broadcast %cst_84 : f32 to vector<2x32xf32>
    %286 = arith.addf %284, %285 : vector<2x32xf32>
    %cst_85 = arith.constant 5.000000e-01 : f32
    %287 = vector.broadcast %cst_85 : f32 to vector<2x32xf32>
    %288 = arith.mulf %287, %286 : vector<2x32xf32>
    %289 = vector.extract_strided_slice %278 {offsets = [0, 64], sizes = [2, 32], strides = [1, 1]} : vector<2x256xf32> to vector<2x32xf32>
    %290 = vector.extract_strided_slice %278 {offsets = [0, 96], sizes = [2, 32], strides = [1, 1]} : vector<2x256xf32> to vector<2x32xf32>
    %cst_86 = arith.constant 1.000000e+00 : f32
    %291 = vector.broadcast %cst_86 : f32 to vector<2x32xf32>
    %292 = arith.addf %290, %291 : vector<2x32xf32>
    %cst_87 = arith.constant 5.000000e-01 : f32
    %293 = vector.broadcast %cst_87 : f32 to vector<2x32xf32>
    %294 = arith.mulf %293, %292 : vector<2x32xf32>
    %295 = arith.mulf %288, %249 : vector<2x32xf32>
    %296 = arith.mulf %283, %289 : vector<2x32xf32>
    %297 = arith.addf %295, %296 : vector<2x32xf32>
    %298 = math.tanh %297 : vector<2x32xf32>
    %299 = arith.mulf %294, %298 : vector<2x32xf32>
    %300 = vector.extract_strided_slice %278 {offsets = [0, 128], sizes = [2, 32], strides = [1, 1]} : vector<2x256xf32> to vector<2x32xf32>
    %cst_88 = arith.constant 1.000000e+00 : f32
    %301 = vector.broadcast %cst_88 : f32 to vector<2x32xf32>
    %302 = arith.addf %300, %301 : vector<2x32xf32>
    %cst_89 = arith.constant 5.000000e-01 : f32
    %303 = vector.broadcast %cst_89 : f32 to vector<2x32xf32>
    %304 = arith.mulf %303, %302 : vector<2x32xf32>
    %305 = vector.extract_strided_slice %278 {offsets = [0, 160], sizes = [2, 32], strides = [1, 1]} : vector<2x256xf32> to vector<2x32xf32>
    %cst_90 = arith.constant 1.000000e+00 : f32
    %306 = vector.broadcast %cst_90 : f32 to vector<2x32xf32>
    %307 = arith.addf %305, %306 : vector<2x32xf32>
    %cst_91 = arith.constant 5.000000e-01 : f32
    %308 = vector.broadcast %cst_91 : f32 to vector<2x32xf32>
    %309 = arith.mulf %308, %307 : vector<2x32xf32>
    %310 = vector.extract_strided_slice %278 {offsets = [0, 192], sizes = [2, 32], strides = [1, 1]} : vector<2x256xf32> to vector<2x32xf32>
    %311 = vector.extract_strided_slice %278 {offsets = [0, 224], sizes = [2, 32], strides = [1, 1]} : vector<2x256xf32> to vector<2x32xf32>
    %cst_92 = arith.constant 1.000000e+00 : f32
    %312 = vector.broadcast %cst_92 : f32 to vector<2x32xf32>
    %313 = arith.addf %311, %312 : vector<2x32xf32>
    %cst_93 = arith.constant 5.000000e-01 : f32
    %314 = vector.broadcast %cst_93 : f32 to vector<2x32xf32>
    %315 = arith.mulf %314, %313 : vector<2x32xf32>
    %316 = arith.mulf %309, %270 : vector<2x32xf32>
    %317 = arith.mulf %304, %310 : vector<2x32xf32>
    %318 = arith.addf %316, %317 : vector<2x32xf32>
    %319 = math.tanh %318 : vector<2x32xf32>
    %320 = arith.mulf %315, %319 : vector<2x32xf32>
    %321 = vector.extract_strided_slice %5 {offsets = [14, 0], sizes = [2, 256], strides = [1, 1]} : vector<18x256xf32> to vector<2x256xf32>
    %322 = tpu.concatenate %299, %320 in 1 : vector<2x32xf32>, vector<2x32xf32> -> vector<2x64xf32>
    %323 = arith.truncf %322 : vector<2x64xf32> to vector<2x64xbf16>
    %cst_94 = arith.constant dense<0.000000e+00> : vector<2x256xf32>
    %324 = tpu.matmul %323, %6, %cst_94 {dimension_numbers = #tpu.dot_dimension_numbers<[1], [0], [0], [1], [0, 0, 1, 1], [], []>} : vector<2x64xbf16>, vector<64x256xbf16>, vector<2x256xf32> -> vector<2x256xf32>
    %325 = arith.addf %321, %324 : vector<2x256xf32>
    %326 = math.tanh %325 : vector<2x256xf32>
    %327 = vector.extract_strided_slice %326 {offsets = [0, 0], sizes = [2, 32], strides = [1, 1]} : vector<2x256xf32> to vector<2x32xf32>
    %cst_95 = arith.constant 1.000000e+00 : f32
    %328 = vector.broadcast %cst_95 : f32 to vector<2x32xf32>
    %329 = arith.addf %327, %328 : vector<2x32xf32>
    %cst_96 = arith.constant 5.000000e-01 : f32
    %330 = vector.broadcast %cst_96 : f32 to vector<2x32xf32>
    %331 = arith.mulf %330, %329 : vector<2x32xf32>
    %332 = vector.extract_strided_slice %326 {offsets = [0, 32], sizes = [2, 32], strides = [1, 1]} : vector<2x256xf32> to vector<2x32xf32>
    %cst_97 = arith.constant 1.000000e+00 : f32
    %333 = vector.broadcast %cst_97 : f32 to vector<2x32xf32>
    %334 = arith.addf %332, %333 : vector<2x32xf32>
    %cst_98 = arith.constant 5.000000e-01 : f32
    %335 = vector.broadcast %cst_98 : f32 to vector<2x32xf32>
    %336 = arith.mulf %335, %334 : vector<2x32xf32>
    %337 = vector.extract_strided_slice %326 {offsets = [0, 64], sizes = [2, 32], strides = [1, 1]} : vector<2x256xf32> to vector<2x32xf32>
    %338 = vector.extract_strided_slice %326 {offsets = [0, 96], sizes = [2, 32], strides = [1, 1]} : vector<2x256xf32> to vector<2x32xf32>
    %cst_99 = arith.constant 1.000000e+00 : f32
    %339 = vector.broadcast %cst_99 : f32 to vector<2x32xf32>
    %340 = arith.addf %338, %339 : vector<2x32xf32>
    %cst_100 = arith.constant 5.000000e-01 : f32
    %341 = vector.broadcast %cst_100 : f32 to vector<2x32xf32>
    %342 = arith.mulf %341, %340 : vector<2x32xf32>
    %343 = arith.mulf %336, %297 : vector<2x32xf32>
    %344 = arith.mulf %331, %337 : vector<2x32xf32>
    %345 = arith.addf %343, %344 : vector<2x32xf32>
    %346 = math.tanh %345 : vector<2x32xf32>
    %347 = arith.mulf %342, %346 : vector<2x32xf32>
    %348 = vector.extract_strided_slice %326 {offsets = [0, 128], sizes = [2, 32], strides = [1, 1]} : vector<2x256xf32> to vector<2x32xf32>
    %cst_101 = arith.constant 1.000000e+00 : f32
    %349 = vector.broadcast %cst_101 : f32 to vector<2x32xf32>
    %350 = arith.addf %348, %349 : vector<2x32xf32>
    %cst_102 = arith.constant 5.000000e-01 : f32
    %351 = vector.broadcast %cst_102 : f32 to vector<2x32xf32>
    %352 = arith.mulf %351, %350 : vector<2x32xf32>
    %353 = vector.extract_strided_slice %326 {offsets = [0, 160], sizes = [2, 32], strides = [1, 1]} : vector<2x256xf32> to vector<2x32xf32>
    %cst_103 = arith.constant 1.000000e+00 : f32
    %354 = vector.broadcast %cst_103 : f32 to vector<2x32xf32>
    %355 = arith.addf %353, %354 : vector<2x32xf32>
    %cst_104 = arith.constant 5.000000e-01 : f32
    %356 = vector.broadcast %cst_104 : f32 to vector<2x32xf32>
    %357 = arith.mulf %356, %355 : vector<2x32xf32>
    %358 = vector.extract_strided_slice %326 {offsets = [0, 192], sizes = [2, 32], strides = [1, 1]} : vector<2x256xf32> to vector<2x32xf32>
    %359 = vector.extract_strided_slice %326 {offsets = [0, 224], sizes = [2, 32], strides = [1, 1]} : vector<2x256xf32> to vector<2x32xf32>
    %cst_105 = arith.constant 1.000000e+00 : f32
    %360 = vector.broadcast %cst_105 : f32 to vector<2x32xf32>
    %361 = arith.addf %359, %360 : vector<2x32xf32>
    %cst_106 = arith.constant 5.000000e-01 : f32
    %362 = vector.broadcast %cst_106 : f32 to vector<2x32xf32>
    %363 = arith.mulf %362, %361 : vector<2x32xf32>
    %364 = arith.mulf %357, %318 : vector<2x32xf32>
    %365 = arith.mulf %352, %358 : vector<2x32xf32>
    %366 = arith.addf %364, %365 : vector<2x32xf32>
    %367 = math.tanh %366 : vector<2x32xf32>
    %368 = arith.mulf %363, %367 : vector<2x32xf32>
    %369 = vector.extract_strided_slice %5 {offsets = [16, 0], sizes = [2, 256], strides = [1, 1]} : vector<18x256xf32> to vector<2x256xf32>
    %370 = tpu.concatenate %347, %368 in 1 : vector<2x32xf32>, vector<2x32xf32> -> vector<2x64xf32>
    %371 = arith.truncf %370 : vector<2x64xf32> to vector<2x64xbf16>
    %cst_107 = arith.constant dense<0.000000e+00> : vector<2x256xf32>
    %372 = tpu.matmul %371, %6, %cst_107 {dimension_numbers = #tpu.dot_dimension_numbers<[1], [0], [0], [1], [0, 0, 1, 1], [], []>} : vector<2x64xbf16>, vector<64x256xbf16>, vector<2x256xf32> -> vector<2x256xf32>
    %373 = arith.addf %369, %372 : vector<2x256xf32>
    %374 = math.tanh %373 : vector<2x256xf32>
    %375 = vector.extract_strided_slice %374 {offsets = [0, 128], sizes = [2, 32], strides = [1, 1]} : vector<2x256xf32> to vector<2x32xf32>
    %cst_108 = arith.constant 1.000000e+00 : f32
    %376 = vector.broadcast %cst_108 : f32 to vector<2x32xf32>
    %377 = arith.addf %375, %376 : vector<2x32xf32>
    %cst_109 = arith.constant 5.000000e-01 : f32
    %378 = vector.broadcast %cst_109 : f32 to vector<2x32xf32>
    %379 = arith.mulf %378, %377 : vector<2x32xf32>
    %380 = vector.extract_strided_slice %374 {offsets = [0, 160], sizes = [2, 32], strides = [1, 1]} : vector<2x256xf32> to vector<2x32xf32>
    %cst_110 = arith.constant 1.000000e+00 : f32
    %381 = vector.broadcast %cst_110 : f32 to vector<2x32xf32>
    %382 = arith.addf %380, %381 : vector<2x32xf32>
    %cst_111 = arith.constant 5.000000e-01 : f32
    %383 = vector.broadcast %cst_111 : f32 to vector<2x32xf32>
    %384 = arith.mulf %383, %382 : vector<2x32xf32>
    %385 = vector.extract_strided_slice %374 {offsets = [0, 192], sizes = [2, 32], strides = [1, 1]} : vector<2x256xf32> to vector<2x32xf32>
    %386 = vector.extract_strided_slice %374 {offsets = [0, 224], sizes = [2, 32], strides = [1, 1]} : vector<2x256xf32> to vector<2x32xf32>
    %cst_112 = arith.constant 1.000000e+00 : f32
    %387 = vector.broadcast %cst_112 : f32 to vector<2x32xf32>
    %388 = arith.addf %386, %387 : vector<2x32xf32>
    %cst_113 = arith.constant 5.000000e-01 : f32
    %389 = vector.broadcast %cst_113 : f32 to vector<2x32xf32>
    %390 = arith.mulf %389, %388 : vector<2x32xf32>
    %391 = arith.mulf %384, %366 : vector<2x32xf32>
    %392 = arith.mulf %379, %385 : vector<2x32xf32>
    %393 = arith.addf %391, %392 : vector<2x32xf32>
    %394 = math.tanh %393 : vector<2x32xf32>
    %395 = arith.mulf %390, %394 : vector<2x32xf32>
    %396 = arith.truncf %395 : vector<2x32xf32> to vector<2x32xbf16>
    %c0_114 = arith.constant 0 : index
    %c0_115 = arith.constant 0 : index
    %397 = vector.load %arg4[%c0_114, %c0_115] : memref<32x128xbf16, #tpu.memory_space<vmem>>, vector<32x128xbf16>
    %cst_116 = arith.constant dense<0.000000e+00> : vector<2x128xf32>
    %398 = tpu.matmul %396, %397, %cst_116 {dimension_numbers = #tpu.dot_dimension_numbers<[1], [0], [0], [1], [0, 0, 1, 1], [], []>} : vector<2x32xbf16>, vector<32x128xbf16>, vector<2x128xf32> -> vector<2x128xf32>
    %c0_117 = arith.constant 0 : index
    %c0_118 = arith.constant 0 : index
    %399 = vector.load %arg5[%c0_117, %c0_118] : memref<1x128xf32, #tpu.memory_space<vmem>>, vector<1x128xf32>
    %400 = vector.broadcast %399 : vector<1x128xf32> to vector<2x128xf32>
    %401 = arith.addf %398, %400 : vector<2x128xf32>
    %c0_119 = arith.constant 0 : index
    %c0_120 = arith.constant 0 : index
    %402 = vector.load %arg6[%c0_119, %c0_120] : memref<2x128xf32, #tpu.memory_space<vmem>>, vector<2x128xf32>
    tpu.vector_store %arg6[%c0_119, %c0_120], %401 {strides = array<i32>} : memref<2x128xf32, #tpu.memory_space<vmem>>, vector<2x128xf32>,
    return
  }
}

</mosaic_0001>

<bundles_post_ra>
// kernel: tpu_custom_call.1
= control target key start
LH: loop header
LB: loop body
LE: loop exit
PB: predicated region body
PF: predicated region fallthrough
CT: control target
= control target key end

     0   :  { %11 = vsyncpa [#allocation3], 0  ;;  %s1780_s0 = inlined_call_operand.hbm [shape: bf16[18,18], index: 0, kind: input, shape index: {}]   ;;  %s1781_s1 = inlined_call_operand.hbm [shape: bf16[18,256], index: 1, kind: input, shape index: {}]   ;;  %s1782_s2 = inlined_call_operand.vmem [shape: f32[1,256], index: 2, kind: input, shape index: {}]   ;;  %s1783_s3 = inlined_call_operand.hbm [shape: bf16[64,256], index: 3, kind: input, shape index: {}]   ;;  %s1784_s4 = inlined_call_operand.hbm [shape: bf16[32,128], index: 4, kind: input, shape index: {}]   ;;  %s1785_s5 = inlined_call_operand.vmem [shape: f32[1,128], index: 5, kind: input, shape index: {}]   ;;  %s1786_s6 = inlined_call_operand.hbm [shape: f32[2,128], index: 6, kind: output, shape index: {}]  }
   0x1   :  { %12 = vsyncpa [#allocation6], 0 }
   0x2   :  { %13 = vsyncpa [#allocation9], 0 }
   0x3   :  { %14 = vsyncpa [#allocation4], 0  ;;  %s1436_s21 = smov [#allocation5]   ;;  %s1318_s25 = scalar_lea.hbm %s1781_s1, 384 }
   0x4   :  { %s32_s22 = sshll.u32 %s1436_s21, 4  ;;  %p1319_p0 = scmp.ne.s32.totalorder %s1781_s1, %s1318_s25  ;;  %s33_s22 = int_to_ptr.vmem [resolvable:$true] %s32_s22 }
   0x5   :  { %p1322_p1 = scmp.lt.u32.totalorder %s1318_s25, %s1781_s1 }
   0x7   :  { %p1324_p2 = pnand %p1322_p1, %p1319_p0 }
   0x9   :  { %1327 = shalt.err (!%p1324_p2)
}
   0xa   :  { %s1328_s30 = scalar_lea.vmem %s33_s22, 384  ;;  %p1333_p4 = scmp.lt.s32.totalorder %s33_s22, %s33_s22 }
   0xb   :  { %p1329_p3 = scmp.ne.s32.totalorder %s33_s22, %s1328_s30  ;;  %p1334_p5 = scmp.lt.s32.totalorder %s1328_s30, %s1328_s30 }
   0xd   :  { %p1335_p6 = por %p1334_p5, %p1333_p4 }
   0xf   :  { %p1336_p7 = pnand %p1335_p6, %p1329_p3 }
  0x11   :  { %1339 = shalt.err (!%p1336_p7)
}
  0x12   :  { %s1437_s7 = smov 128   ;;  %s1438_s8 = smov 8  }
  0x13   :  { %38 = dma.hbm_to_vmem [thread:$0]  %s1781_s1, 384, %s33_s22, [#allocation6], %s1437_s7, %s1437_s7, %s1438_s8  }
  0x14   :  { %s1439_s11 = smov [#allocation2]   ;;  %s1340_s15 = scalar_lea.hbm %s1780_s0, 192 }
  0x15   :  { %s20_s12 = sshll.u32 %s1439_s11, 4  ;;  %p1341_p8 = scmp.ne.s32.totalorder %s1780_s0, %s1340_s15  ;;  %s21_s12 = int_to_ptr.vmem [resolvable:$true] %s20_s12 }
  0x16   :  { %p1344_p9 = scmp.lt.u32.totalorder %s1340_s15, %s1780_s0 }
  0x18   :  { %p1346_p10 = pnand %p1344_p9, %p1341_p8 }
  0x1a   :  { %1349 = shalt.err (!%p1346_p10)
}
  0x1b   :  { %s1350_s20 = scalar_lea.vmem %s21_s12, 192  ;;  %p1355_p12 = scmp.lt.s32.totalorder %s21_s12, %s21_s12 }
  0x1c   :  { %p1351_p11 = scmp.ne.s32.totalorder %s21_s12, %s1350_s20  ;;  %p1356_p13 = scmp.lt.s32.totalorder %s1350_s20, %s1350_s20 }
  0x1e   :  { %p1357_p0 = por %p1356_p13, %p1355_p12 }
  0x20   :  { %p1358_p1 = pnand %p1357_p0, %p1351_p11 }
  0x22   :  { %1361 = shalt.err (!%p1358_p1)
}
  0x23   :  { %s1440_s1 = smov 64   ;;  %s1441_s21 = smov 4  }
  0x24   :  { %26 = dma.hbm_to_vmem [thread:$0]  %s1780_s0, 192, %s21_s12, [#allocation3], %s1440_s1, %s1440_s1, %s1441_s21  }
  0x25   :  { %s1442_s24 = smov [#allocation7]   ;;  %s1443_s26 = smov [#allocation8]  }
  0x26   :  { %s46_s25 = sshll.u32 %s1442_s24, 4  ;;  %s58_s27 = sshll.u32 %s1443_s26, 4  ;;  %s47_s25 = int_to_ptr.vmem [resolvable:$true] %s46_s25  ;;  %s1514_s27 = int_to_ptr.vmem [resolvable:$true] %s58_s27 }
  0x27   :  { %s1362_s30 = scalar_lea.hbm %s1783_s3, 1024 }
  0x28   :  { %p1363_p2 = scmp.ne.s32.totalorder %s1783_s3, %s1362_s30  ;;  %p1366_p3 = scmp.lt.u32.totalorder %s1362_s30, %s1783_s3 }
  0x2a   :  { %p1368_p4 = pnand %p1366_p3, %p1363_p2 }
  0x2c   :  { %1371 = shalt.err (!%p1368_p4)
}
  0x2d   :  { %s1372_s0 = scalar_lea.vmem %s47_s25, 1024  ;;  %p1377_p6 = scmp.lt.s32.totalorder %s47_s25, %s47_s25 }
  0x2e   :  { %p1373_p5 = scmp.ne.s32.totalorder %s47_s25, %s1372_s0  ;;  %p1378_p7 = scmp.lt.s32.totalorder %s1372_s0, %s1372_s0 }
  0x30   :  { %p1379_p8 = por %p1378_p7, %p1377_p6 }
  0x32   :  { %p1380_p9 = pnand %p1379_p8, %p1373_p5 }
  0x34   :  { %1383 = shalt.err (!%p1380_p9)
}
  0x35   :  { %52 = dma.hbm_to_vmem [thread:$0]  %s1783_s3, 1024, %s47_s25, [#allocation6], %s1437_s7, %s1437_s7, %s1438_s8  }
  0x36   :  { %s1384_s17 = scalar_lea.hbm %s1784_s4, 256 }
  0x37   :  { %p1385_p10 = scmp.ne.s32.totalorder %s1784_s4, %s1384_s17  ;;  %p1388_p11 = scmp.lt.u32.totalorder %s1384_s17, %s1784_s4 }
  0x39   :  { %p1390_p12 = pnand %p1388_p11, %p1385_p10 }
  0x3b   :  { %1393 = shalt.err (!%p1390_p12)
}
  0x3c   :  { %s1394_s23 = scalar_lea.vmem %s1514_s27, 256  ;;  %p1399_p0 = scmp.lt.s32.totalorder %s1514_s27, %s1514_s27 }
  0x3d   :  { %p1395_p13 = scmp.ne.s32.totalorder %s1514_s27, %s1394_s23  ;;  %p1400_p1 = scmp.lt.s32.totalorder %s1394_s23, %s1394_s23 }
  0x3f   :  { %p1401_p2 = por %p1400_p1, %p1399_p0 }
  0x41   :  { %p1402_p3 = pnand %p1401_p2, %p1395_p13 }
  0x43   :  { %1405 = shalt.err (!%p1402_p3)
}
  0x44   :  { %64 = dma.hbm_to_vmem [thread:$0]  %s1784_s4, 256, %s1514_s27, [#allocation9], %s1440_s1, %s1440_s1, %s1441_s21  }
  0x45   :  { %1428 = dma.done.wait [#allocation3], 192  }
  0x46   :  { %1429 = vsyncadd [#allocation3], 4294967104 }
  0x47   :  { %1430 = dma.done.wait [#allocation6], 1408  }
  0x48   :  { %1431 = vsyncadd [#allocation6], 4294965888 }
  0x49   :  { %1432 = dma.done.wait [#allocation9], 256  }
  0x4a   :  { %1433 = vsyncadd [#allocation9], 4294967040  ;;  %v88_v0 = vlaneseq  ;;  %v1444_v1 = vmov 0   ;;  %v1233_v4 = vld [vmem:[#allocation5 + $0x4] ss:$8 sps:$4 sm:$0xff]   ;;  %vm128_vm0 = vcmask 1040384  }
  0x4b   :  { %167 = vmatprep.mubr.bf16.mxu0 %v1444_v1  ;;  %296 = vmatprep.mubr.bf16.mxu1 %v1444_v1  ;;  %v1235_v5 = vld [vmem:[#allocation5] ss:$8 sps:$4 sm:$0xff]   ;;  %v85_v6 = vld [vmem:[#allocation5 + $0x10] sm:$0x11]  ;;  %vm121_vm1 = vcmask 146432   ;;  %vm217_vm2 = vcmask 261120  }
  0x4c   :  { %v89_v2 = vshrl.u32 %v88_v0, 7  ;;  %135 = vmatprep.subr.bf16.mxu0 %v1233_v4  ;;  %v1180_v7 = vcombine.high %v85_v6, %v85_v6  ;;  %v1179_v8 = vcombine.low %v85_v6, %v85_v6  ;;  %v86_v9 = vld [vmem:[%s1782_s2] sm:$0x3]  ;;  %s1445_s2 = smov 32   ;;  %v1574_v29 = vld [vmem:[#allocation7 + $0x4] ss:$8 sps:$4 sm:$0xff]  }
  0x4d   :  { %136 = vmatpush1.bf16.msra.mxu0 %v1235_v5  ;;  %v1238_v12 = vld [vmem:[#allocation2] sm:$0xff]   ;;  %264 = vmatprep.subr.bf16.mxu1 %v1574_v29  ;;  %v1583_v32 = vld [vmem:[#allocation7 + $0x10] ss:$8 sps:$4 sm:$0xff]   ;;  %v1587_v33 = vld [vmem:[#allocation7 + $0x24] ss:$8 sps:$4 sm:$0xff]   ;;  %vm260_vm3 = vcmask 523264  }
  0x4e   :  { %v94_v3 = vsub.s32 1, %v89_v2  ;;  %1181 = vmatprep.subr.msk.bf16.mxu0 %vm128_vm0, %v1180_v7  ;;  %v130_v11 = vsel %vm128_vm0, %v1179_v8, 0  ;;  %v90_v13 = vsub.s32 0, %v89_v2  ;;  %v1576_v30 = vld [vmem:[#allocation7] ss:$8 sps:$4 sm:$0xff]   ;;  %vm1447_vm4 = vmmov 0  }
  0x4f   :  { %v1578_v31 = vld [vmem:[#allocation7 + $0x14] ss:$8 sps:$4 sm:$0xff]   ;;  %265 = vmatpush1.bf16.msra.mxu1 %v1576_v30  ;;  %v1591_v34 = vld [vmem:[#allocation7 + $0x20] ss:$8 sps:$4 sm:$0xff]   ;;  %v1603_v37 = vld [vmem:[#allocation7 + $0x30] ss:$8 sps:$4 sm:$0xff]  }
  0x50   :  { %v1556_v10 = vrot.slane %v86_v9, %v94_v3  ;;  %v91_v14 = vrot.slane %v86_v9, %v90_v13  ;;  %266 = vmatprep.subr.bf16.mxu1 %v1578_v31  ;;  %v1595_v35 = vld [vmem:[#allocation7 + $0x34] ss:$8 sps:$4 sm:$0xff]   ;;  %v1251_v6 = vld [vmem:[#allocation2 + $0x8] ss:$0 sps:$4 sm:$0x11]   ;;  %s1448_s25 = smov [#allocation10]  }
  0x51   :  { %138 = vmatpush1.bf16.msra.mxu0 %v130_v11  ;;  %s1164_s26 = sshll.u32 %s1448_s25, 4  ;;  %s1165_s26 = int_to_ptr.vmem [resolvable:$true] %s1164_s26 }
  0x52   :  { %371 = vmatprep.subr.bf16.mxu0 %v1574_v29  ;;  %p1411_p5 = scmp.lt.s32.totalorder %s1165_s26, %s1165_s26 }
  0x53   :  { %267 = vmatpush1.bf16.msra.mxu1 %v1583_v32 }
  0x54   :  { %1182 = vmatmul.mubr.msk.bf16.vlgmr.msra.gmra.mrb[0].mxu0 %vm121_vm1, %v1238_v12  ;;  %268 = vmatprep.subr.bf16.mxu1 %v1587_v33 }
  0x55   :  { %177 = vmatprep.mubr.bf16.mxu0 %v1444_v1  ;;  %372 = vmatpush1.bf16.msra.mxu0 %v1576_v30 }
  0x56   :  { %373 = vmatprep.subr.bf16.mxu0 %v1578_v31 }
  0x57   :  { %269 = vmatpush1.bf16.msra.mxu1 %v1591_v34 }
  0x58   :  { %270 = vmatprep.subr.bf16.mxu1 %v1595_v35 }
  0x59   :  { %374 = vmatpush1.bf16.msra.mxu0 %v1583_v32 }
  0x5a   :  { %375 = vmatprep.subr.bf16.mxu0 %v1587_v33 }
  0x5b   :  { %271 = vmatpush1.bf16.msra.mxu1 %v1603_v37 }
  0x5c   :  { %481 = vmatprep.subr.bf16.mxu1 %v1574_v29  ;;  %1183 = vmatmul.mubr.msk.bf16.gmra.mrb[4].mxu0 %vm121_vm1, %v1251_v6 }
  0x5d   :  { %376 = vmatpush1.bf16.msra.mxu0 %v1591_v34  ;;  %403 = vmatprep.mubr.bf16.mxu0 %v1444_v1 }
  0x5e   :  { %377 = vmatprep.subr.bf16.mxu0 %v1595_v35 }
  0x61   :  { %378 = vmatpush1.bf16.msra.mxu0 %v1603_v37 }
  0x62   :  { %591 = vmatprep.subr.bf16.mxu0 %v1574_v29 }
 0x127   :  { %v169_v15 = vpop.f32.mrb[0].mxu0 }
 0x128   :  { %v1560_v16 = vadd.f32 %v169_v15, %v91_v14  ;;  %v1562_v17 = vpop.f32.mrb[1].mxu0 }
 0x129   :  { %v173_v18 = vpop.f32.mrb[2].mxu0  ;;  %v1623_v46 = vadd.f32 %v1562_v17, %v1556_v10 }
 0x12a   :  { %1254 = vtanh.f32 %v1560_v16  ;;  %v1565_v19 = vadd.f32 %v173_v18, %v91_v14  ;;  %v1567_v20 = vpop.f32.mrb[3].mxu0 }
 0x134   :  { %v1255_v21 = vpop.eup %1254 }
 0x135   :  { %198 = vrot.lane.b32.xlu0 %v1255_v21, %s1440_s1  ;;  %v194_v22 = vadd.f32 1.0, %v1255_v21 }
 0x137   :  { %v195_v23 = vmul.f32 0.5, %v194_v22 }
 0x139   :  { %v196_v26 = vmul.f32 0.0, %v195_v23 }
 0x1a7   :  { %v199_v24 = vpop.permute.xlu0 %198 }
 0x1a8   :  { %v201_v25 = vmul.f32 %v199_v24, %v195_v23 }
 0x1aa   :  { %203 = vrot.lane.b32.xlu0 %v201_v25, %s1445_s2 }
 0x21c   :  { %v204_v27 = vpop.permute.xlu0 %203 }
 0x21d   :  { %v1571_v28 = vadd.f32 %v204_v27, %v196_v26 }
 0x21f   :  { %1256 = vtanh.f32 %v1571_v28  ;;  %v318_v62 = vrot.slane %v1571_v28, 6 }
 0x229   :  { %v1257_v36 = vpop.eup %1256 }
 0x22a   :  { %209 = vrot.lane.b32.xlu1 %v1257_v36, %s1440_s1 }
 0x29c   :  { %v210_v38 = vpop.permute.xlu1 %209 }
 0x29d   :  { %v212_v39 = vmul.f32 %v210_v38, %v195_v23 }
 0x29f   :  { %214 = vrot.lane.b32.xlu1 %v212_v39, %s1445_s2 }
 0x311   :  { %v215_v40 = vpop.permute.xlu1 %214 }
 0x312   :  { %v218_v41 = vsel %vm217_vm2, %v215_v40, 0.0 }
 0x313   :  { %v219_v42 = vpack.c.bf16 %v218_v41, %v218_v41 }
 0x315   :  { %1192 = vmatmul.mubr.msk.bf16.vlgmr.msra.gmra.mrb[0].mxu1 %vm260_vm3, %v219_v42 }
 0x316   :  { %482 = vmatpush1.bf16.msra.mxu1 %v1576_v30  ;;  %513 = vmatprep.mubr.bf16.mxu1 %v1444_v1 }
 0x317   :  { %483 = vmatprep.subr.bf16.mxu1 %v1578_v31 }
 0x31a   :  { %484 = vmatpush1.bf16.msra.mxu1 %v1583_v32 }
 0x31b   :  { %485 = vmatprep.subr.bf16.mxu1 %v1587_v33 }
 0x31e   :  { %486 = vmatpush1.bf16.msra.mxu1 %v1591_v34 }
 0x31f   :  { %487 = vmatprep.subr.bf16.mxu1 %v1595_v35 }
 0x322   :  { %488 = vmatpush1.bf16.msra.mxu1 %v1603_v37 }
 0x323   :  { %693 = vmatprep.subr.bf16.mxu1 %v1574_v29 }
 0x3e8   :  { %v298_v43 = vpop.f32.mrb[0].mxu1 }
 0x3e9   :  { %v307_v44 = vrot.slane %v298_v43, 6  ;;  %v300_v45 = vpop.f32.mrb[1].mxu1 }
 0x3ea   :  { %v308_v47 = vrot.slane %v300_v45, 6  ;;  %v302_v48 = vpop.f32.mrb[2].mxu1 }
 0x3eb   :  { %v311_v49 = vadd.f32 %v307_v44, %v1560_v16  ;;  %v303_v50 = vpop.f32.mrb[3].mxu1 }
 0x3ec   :  { %v312_v51 = vadd.f32 %v308_v47, %v1623_v46 }
 0x3ed   :  { %1258 = vtanh.f32 %v311_v49 }
 0x3ee   :  { %1260 = vtanh.f32 %v312_v51 }
 0x3f7   :  { %v1259_v52 = vpop.eup %1258 }
 0x3f8   :  { %v1261_v53 = vpop.eup %1260  ;;  %322 = vrot.lane.b32.xlu0 %v1259_v52, %s1440_s1  ;;  %v315_v54 = vadd.f32 1.0, %v1259_v52 }
 0x3f9   :  { %341 = vrot.lane.b32.xlu1 %v1261_v53, %s1440_s1  ;;  %v337_v55 = vadd.f32 1.0, %v1261_v53 }
 0x3fa   :  { %v316_v56 = vmul.f32 0.5, %v315_v54 }
 0x3fb   :  { %v338_v58 = vmul.f32 0.5, %v337_v55 }
 0x3fc   :  { %v320_v63 = vmul.f32 %v318_v62, %v316_v56 }
 0x3fd   :  { %v339_v2 = vmul.f32 0.0, %v338_v58 }
 0x46a   :  { %v323_v57 = vpop.permute.xlu0 %322 }
 0x46b   :  { %v325_v59 = vmul.f32 %v323_v57, %v316_v56  ;;  %v342_v60 = vpop.permute.xlu1 %341 }
 0x46c   :  { %v344_v61 = vmul.f32 %v342_v60, %v338_v58 }
 0x46d   :  { %327 = vrot.lane.b32.xlu0 %v325_v59, %s1445_s2 }
 0x46e   :  { %346 = vrot.lane.b32.xlu1 %v344_v61, %s1445_s2 }
 0x4df   :  { %v328_v0 = vpop.permute.xlu0 %327 }
 0x4e0   :  { %v330_v3 = vadd.f32 %v328_v0, %v320_v63  ;;  %v347_v4 = vpop.permute.xlu1 %346 }
 0x4e1   :  { %v349_v5 = vadd.f32 %v347_v4, %v339_v2 }
 0x4e2   :  { %1262 = vtanh.f32 %v330_v3  ;;  %v425_v49 = vrot.slane %v330_v3, 6 }
 0x4e3   :  { %1264 = vtanh.f32 %v349_v5  ;;  %v447_v50 = vrot.slane %v349_v5, 6 }
 0x4ec   :  { %v1263_v7 = vpop.eup %1262 }
 0x4ed   :  { %v1265_v8 = vpop.eup %1264  ;;  %333 = vrot.lane.b32.xlu0 %v1263_v7, %s1440_s1 }
 0x4ee   :  { %352 = vrot.lane.b32.xlu1 %v1265_v8, %s1440_s1 }
 0x55f   :  { %v334_v9 = vpop.permute.xlu0 %333 }
 0x560   :  { %v336_v11 = vmul.f32 %v334_v9, %v316_v56  ;;  %v353_v12 = vpop.permute.xlu1 %352 }
 0x561   :  { %v355_v13 = vmul.f32 %v353_v12, %v338_v58 }
 0x562   :  { %357 = vrot.lane.b32.xlu0 %v336_v11, %s1445_s2 }
 0x563   :  { %361 = vrot.lane.b32.xlu1 %v355_v13, %s1440_s1 }
 0x5d4   :  { %v358_v14 = vpop.permute.xlu0 %357 }
 0x5d5   :  { %v362_v15 = vpop.permute.xlu1 %361 }
 0x5d6   :  { %v364_v17 = vsel %vm217_vm2, %v358_v14, %v362_v15 }
 0x5d7   :  { %v365_v18 = vpack.c.bf16 %v364_v17, %v364_v17 }
 0x5d9   :  { %v367_v21 = vrot.slane %v365_v18, 1 }
 0x5db   :  { %1193 = vmatmul.mubr.msk.bf16.vlgmr.msra.gmra.mrb[8].mxu0 %vm260_vm3, %v367_v21 }
 0x5dc   :  { %592 = vmatpush1.bf16.msra.mxu0 %v1576_v30  ;;  %623 = vmatprep.mubr.bf16.mxu0 %v1444_v1 }
 0x5dd   :  { %593 = vmatprep.subr.bf16.mxu0 %v1578_v31 }
 0x5e0   :  { %594 = vmatpush1.bf16.msra.mxu0 %v1583_v32 }
 0x5e1   :  { %595 = vmatprep.subr.bf16.mxu0 %v1587_v33 }
 0x5e4   :  { %596 = vmatpush1.bf16.msra.mxu0 %v1591_v34 }
 0x5e5   :  { %597 = vmatprep.subr.bf16.mxu0 %v1595_v35 }
 0x5e8   :  { %598 = vmatpush1.bf16.msra.mxu0 %v1603_v37 }
 0x5e9   :  { %803 = vmatprep.subr.bf16.mxu0 %v1574_v29 }
 0x6ae   :  { %v405_v22 = vpop.f32.mrb[8].mxu0 }
 0x6af   :  { %v414_v23 = vrot.slane %v405_v22, 4  ;;  %v407_v24 = vpop.f32.mrb[9].mxu0 }
 0x6b0   :  { %v415_v25 = vrot.slane %v407_v24, 4  ;;  %v409_v26 = vpop.f32.mrb[10].mxu0 }
 0x6b1   :  { %v418_v27 = vadd.f32 %v414_v23, %v1560_v16  ;;  %v410_v28 = vpop.f32.mrb[11].mxu0 }
 0x6b2   :  { %v419_v36 = vadd.f32 %v415_v25, %v1623_v46 }
 0x6b3   :  { %1266 = vtanh.f32 %v418_v27 }
 0x6b4   :  { %1268 = vtanh.f32 %v419_v36 }
 0x6bd   :  { %v1267_v38 = vpop.eup %1266 }
 0x6be   :  { %v1269_v39 = vpop.eup %1268  ;;  %429 = vrot.lane.b32.xlu0 %v1267_v38, %s1440_s1  ;;  %v422_v40 = vadd.f32 1.0, %v1267_v38 }
 0x6bf   :  { %451 = vrot.lane.b32.xlu1 %v1269_v39, %s1440_s1  ;;  %v444_v41 = vadd.f32 1.0, %v1269_v39 }
 0x6c0   :  { %v423_v42 = vmul.f32 0.5, %v422_v40 }
 0x6c1   :  { %v445_v44 = vmul.f32 0.5, %v444_v41 }
 0x6c2   :  { %v427_v51 = vmul.f32 %v425_v49, %v423_v42 }
 0x6c3   :  { %v449_v53 = vmul.f32 %v447_v50, %v445_v44 }
 0x730   :  { %v430_v43 = vpop.permute.xlu0 %429 }
 0x731   :  { %v432_v45 = vmul.f32 %v430_v43, %v423_v42  ;;  %v452_v47 = vpop.permute.xlu1 %451 }
 0x732   :  { %v454_v48 = vmul.f32 %v452_v47, %v445_v44 }
 0x733   :  { %434 = vrot.lane.b32.xlu0 %v432_v45, %s1445_s2 }
 0x734   :  { %456 = vrot.lane.b32.xlu1 %v454_v48, %s1445_s2 }
 0x7a5   :  { %v435_v52 = vpop.permute.xlu0 %434 }
 0x7a6   :  { %v437_v54 = vadd.f32 %v435_v52, %v427_v51  ;;  %v457_v55 = vpop.permute.xlu1 %456 }
 0x7a7   :  { %v459_v56 = vadd.f32 %v457_v55, %v449_v53  ;;  %v1693_v53 = vadd.f32 %v1567_v20, %v1556_v10 }
 0x7a8   :  { %1270 = vtanh.f32 %v437_v54 }
 0x7a9   :  { %1272 = vtanh.f32 %v459_v56 }
 0x7b2   :  { %v1271_v57 = vpop.eup %1270 }
 0x7b3   :  { %v1273_v58 = vpop.eup %1272  ;;  %440 = vrot.lane.b32.xlu0 %v1271_v57, %s1440_s1 }
 0x7b4   :  { %462 = vrot.lane.b32.xlu1 %v1273_v58, %s1440_s1 }
 0x825   :  { %v441_v59 = vpop.permute.xlu0 %440 }
 0x826   :  { %v443_v60 = vmul.f32 %v441_v59, %v423_v42  ;;  %v463_v61 = vpop.permute.xlu1 %462 }
 0x827   :  { %v465_v62 = vmul.f32 %v463_v61, %v445_v44 }
 0x828   :  { %467 = vrot.lane.b32.xlu0 %v443_v60, %s1445_s2 }
 0x829   :  { %471 = vrot.lane.b32.xlu1 %v465_v62, %s1440_s1 }
 0x89a   :  { %v468_v63 = vpop.permute.xlu0 %467 }
 0x89b   :  { %v472_v0 = vpop.permute.xlu1 %471 }
 0x89c   :  { %v474_v2 = vsel %vm217_vm2, %v468_v63, %v472_v0 }
 0x89d   :  { %v475_v3 = vpack.c.bf16 %v474_v2, %v474_v2 }
 0x89f   :  { %v477_v4 = vrot.slane %v475_v3, 2 }
 0x8a1   :  { %1194 = vmatmul.mubr.msk.bf16.vlgmr.msra.gmra.mrb[4].mxu1 %vm260_vm3, %v477_v4 }
 0x8a2   :  { %694 = vmatpush1.bf16.msra.mxu1 %v1576_v30  ;;  %725 = vmatprep.mubr.bf16.mxu1 %v1444_v1 }
 0x8a3   :  { %695 = vmatprep.subr.bf16.mxu1 %v1578_v31 }
 0x8a6   :  { %696 = vmatpush1.bf16.msra.mxu1 %v1583_v32 }
 0x8a7   :  { %697 = vmatprep.subr.bf16.mxu1 %v1587_v33 }
 0x8aa   :  { %698 = vmatpush1.bf16.msra.mxu1 %v1591_v34 }
 0x8ab   :  { %699 = vmatprep.subr.bf16.mxu1 %v1595_v35 }
 0x8ae   :  { %700 = vmatpush1.bf16.msra.mxu1 %v1603_v37 }
 0x8af   :  { %913 = vmatprep.subr.bf16.mxu1 %v1574_v29 }
 0x974   :  { %v515_v5 = vpop.f32.mrb[4].mxu1 }
 0x975   :  { %v524_v6 = vrot.slane %v515_v5, 2  ;;  %v517_v7 = vpop.f32.mrb[5].mxu1 }
 0x976   :  { %v525_v8 = vrot.slane %v517_v7, 2  ;;  %v519_v9 = vpop.f32.mrb[6].mxu1 }
 0x977   :  { %v528_v11 = vadd.f32 %v524_v6, %v1560_v16  ;;  %v520_v12 = vpop.f32.mrb[7].mxu1  ;;  %v535_v16 = vrot.slane %v437_v54, 6 }
 0x978   :  { %v529_v13 = vadd.f32 %v525_v8, %v1623_v46  ;;  %v557_v46 = vrot.slane %v459_v56, 6 }
 0x979   :  { %1274 = vtanh.f32 %v528_v11 }
 0x97a   :  { %1276 = vtanh.f32 %v529_v13 }
 0x983   :  { %v1275_v14 = vpop.eup %1274 }
 0x984   :  { %v1277_v15 = vpop.eup %1276  ;;  %539 = vrot.lane.b32.xlu0 %v1275_v14, %s1440_s1  ;;  %v532_v17 = vadd.f32 1.0, %v1275_v14 }
 0x985   :  { %561 = vrot.lane.b32.xlu1 %v1277_v15, %s1440_s1  ;;  %v554_v18 = vadd.f32 1.0, %v1277_v15 }
 0x986   :  { %v533_v21 = vmul.f32 0.5, %v532_v17 }
 0x987   :  { %v555_v23 = vmul.f32 0.5, %v554_v18 }
 0x988   :  { %v537_v27 = vmul.f32 %v535_v16, %v533_v21 }
 0x989   :  { %v559_v36 = vmul.f32 %v557_v46, %v555_v23 }
 0x9f6   :  { %v540_v22 = vpop.permute.xlu0 %539 }
 0x9f7   :  { %v542_v24 = vmul.f32 %v540_v22, %v533_v21  ;;  %v562_v25 = vpop.permute.xlu1 %561 }
 0x9f8   :  { %v564_v26 = vmul.f32 %v562_v25, %v555_v23 }
 0x9f9   :  { %544 = vrot.lane.b32.xlu0 %v542_v24, %s1445_s2 }
 0x9fa   :  { %566 = vrot.lane.b32.xlu1 %v564_v26, %s1445_s2 }
 0xa6b   :  { %v545_v28 = vpop.permute.xlu0 %544 }
 0xa6c   :  { %v547_v38 = vadd.f32 %v545_v28, %v537_v27  ;;  %v567_v39 = vpop.permute.xlu1 %566 }
 0xa6d   :  { %v569_v40 = vadd.f32 %v567_v39, %v559_v36 }
 0xa6e   :  { %1278 = vtanh.f32 %v547_v38  ;;  %v639_v5 = vrot.slane %v547_v38, 6 }
 0xa6f   :  { %1280 = vtanh.f32 %v569_v40  ;;  %v661_v6 = vrot.slane %v569_v40, 6 }
 0xa78   :  { %v1279_v41 = vpop.eup %1278 }
 0xa79   :  { %v1281_v42 = vpop.eup %1280  ;;  %550 = vrot.lane.b32.xlu0 %v1279_v41, %s1440_s1 }
 0xa7a   :  { %572 = vrot.lane.b32.xlu1 %v1281_v42, %s1440_s1 }
 0xaeb   :  { %v551_v43 = vpop.permute.xlu0 %550 }
 0xaec   :  { %v553_v44 = vmul.f32 %v551_v43, %v533_v21  ;;  %v573_v45 = vpop.permute.xlu1 %572 }
 0xaed   :  { %v575_v47 = vmul.f32 %v573_v45, %v555_v23 }
 0xaee   :  { %577 = vrot.lane.b32.xlu0 %v553_v44, %s1445_s2 }
 0xaef   :  { %581 = vrot.lane.b32.xlu1 %v575_v47, %s1440_s1 }
 0xb60   :  { %v578_v48 = vpop.permute.xlu0 %577 }
 0xb61   :  { %v582_v49 = vpop.permute.xlu1 %581 }
 0xb62   :  { %v584_v50 = vsel %vm217_vm2, %v578_v48, %v582_v49 }
 0xb63   :  { %v585_v51 = vpack.c.bf16 %v584_v50, %v584_v50 }
 0xb65   :  { %v587_v52 = vrot.slane %v585_v51, 3 }
 0xb67   :  { %1195 = vmatmul.mubr.msk.bf16.vlgmr.msra.gmra.mrb[12].mxu0 %vm260_vm3, %v587_v52 }
 0xb68   :  { %804 = vmatpush1.bf16.msra.mxu0 %v1576_v30  ;;  %835 = vmatprep.mubr.bf16.mxu0 %v1444_v1 }
 0xb69   :  { %805 = vmatprep.subr.bf16.mxu0 %v1578_v31 }
 0xb6c   :  { %806 = vmatpush1.bf16.msra.mxu0 %v1583_v32 }
 0xb6d   :  { %807 = vmatprep.subr.bf16.mxu0 %v1587_v33 }
 0xb70   :  { %808 = vmatpush1.bf16.msra.mxu0 %v1591_v34 }
 0xb71   :  { %809 = vmatprep.subr.bf16.mxu0 %v1595_v35 }
 0xb74   :  { %810 = vmatpush1.bf16.msra.mxu0 %v1603_v37 }
 0xb75   :  { %1023 = vmatprep.subr.bf16.mxu0 %v1574_v29 }
 0xc3a   :  { %v625_v54 = vpop.f32.mrb[12].mxu0 }
 0xc3b   :  { %v632_v55 = vadd.f32 %v625_v54, %v1565_v19  ;;  %v627_v56 = vpop.f32.mrb[13].mxu0 }
 0xc3c   :  { %v633_v57 = vadd.f32 %v627_v56, %v1693_v53  ;;  %v629_v58 = vpop.f32.mrb[14].mxu0 }
 0xc3d   :  { %1282 = vtanh.f32 %v632_v55  ;;  %v630_v59 = vpop.f32.mrb[15].mxu0 }
 0xc3e   :  { %1284 = vtanh.f32 %v633_v57 }
 0xc47   :  { %v1283_v60 = vpop.eup %1282 }
 0xc48   :  { %v1285_v61 = vpop.eup %1284  ;;  %643 = vrot.lane.b32.xlu0 %v1283_v60, %s1440_s1  ;;  %v636_v29 = vadd.f32 1.0, %v1283_v60 }
 0xc49   :  { %665 = vrot.lane.b32.xlu1 %v1285_v61, %s1440_s1  ;;  %v658_v62 = vadd.f32 1.0, %v1285_v61 }
 0xc4a   :  { %v637_v20 = vmul.f32 0.5, %v636_v29 }
 0xc4b   :  { %v659_v0 = vmul.f32 0.5, %v658_v62 }
 0xc4c   :  { %v641_v7 = vmul.f32 %v639_v5, %v637_v20 }
 0xc4d   :  { %v663_v9 = vmul.f32 %v661_v6, %v659_v0 }
 0xcba   :  { %v644_v63 = vpop.permute.xlu0 %643 }
 0xcbb   :  { %v646_v2 = vmul.f32 %v644_v63, %v637_v20  ;;  %v666_v3 = vpop.permute.xlu1 %665 }
 0xcbc   :  { %v668_v4 = vmul.f32 %v666_v3, %v659_v0 }
 0xcbd   :  { %648 = vrot.lane.b32.xlu0 %v646_v2, %s1445_s2 }
 0xcbe   :  { %670 = vrot.lane.b32.xlu1 %v668_v4, %s1445_s2 }
 0xd2f   :  { %v649_v8 = vpop.permute.xlu0 %648 }
 0xd30   :  { %v651_v11 = vadd.f32 %v649_v8, %v641_v7  ;;  %v671_v12 = vpop.permute.xlu1 %670 }
 0xd31   :  { %v673_v13 = vadd.f32 %v671_v12, %v663_v9 }
 0xd32   :  { %1286 = vtanh.f32 %v651_v11  ;;  %v747_v52 = vrot.slane %v651_v11, 6 }
 0xd33   :  { %1288 = vtanh.f32 %v673_v13  ;;  %v769_v54 = vrot.slane %v673_v13, 6 }
 0xd3c   :  { %v1287_v14 = vpop.eup %1286 }
 0xd3d   :  { %v1289_v15 = vpop.eup %1288  ;;  %654 = vrot.lane.b32.xlu0 %v1287_v14, %s1440_s1 }
 0xd3e   :  { %676 = vrot.lane.b32.xlu1 %v1289_v15, %s1440_s1 }
 0xdaf   :  { %v655_v17 = vpop.permute.xlu0 %654 }
 0xdb0   :  { %v657_v18 = vmul.f32 %v655_v17, %v637_v20  ;;  %v677_v21 = vpop.permute.xlu1 %676 }
 0xdb1   :  { %v679_v22 = vmul.f32 %v677_v21, %v659_v0 }
 0xdb2   :  { %681 = vrot.lane.b32.xlu0 %v657_v18, %s1445_s2 }
 0xdb3   :  { %685 = vrot.lane.b32.xlu1 %v679_v22, %s1440_s1 }
 0xe24   :  { %v682_v23 = vpop.permute.xlu0 %681 }
 0xe25   :  { %v686_v24 = vpop.permute.xlu1 %685 }
 0xe26   :  { %v688_v25 = vsel %vm217_vm2, %v682_v23, %v686_v24 }
 0xe27   :  { %v689_v26 = vpack.c.bf16 %v688_v25, %v688_v25 }
 0xe29   :  { %1196 = vmatmul.mubr.msk.bf16.vlgmr.msra.gmra.mrb[8].mxu1 %vm260_vm3, %v689_v26 }
 0xe2a   :  { %914 = vmatpush1.bf16.msra.mxu1 %v1576_v30  ;;  %945 = vmatprep.mubr.bf16.mxu1 %v1444_v1 }
 0xe2b   :  { %915 = vmatprep.subr.bf16.mxu1 %v1578_v31 }
 0xe2e   :  { %916 = vmatpush1.bf16.msra.mxu1 %v1583_v32 }
 0xe2f   :  { %917 = vmatprep.subr.bf16.mxu1 %v1587_v33 }
 0xe32   :  { %918 = vmatpush1.bf16.msra.mxu1 %v1591_v34 }
 0xe33   :  { %919 = vmatprep.subr.bf16.mxu1 %v1595_v35 }
 0xe36   :  { %920 = vmatpush1.bf16.msra.mxu1 %v1603_v37 }
 0xefc   :  { %v727_v16 = vpop.f32.mrb[8].mxu1 }
 0xefd   :  { %v736_v46 = vrot.slane %v727_v16, 6  ;;  %v729_v27 = vpop.f32.mrb[9].mxu1 }
 0xefe   :  { %v737_v28 = vrot.slane %v729_v27, 6  ;;  %v731_v36 = vpop.f32.mrb[10].mxu1 }
 0xeff   :  { %v740_v38 = vadd.f32 %v736_v46, %v1565_v19  ;;  %v732_v39 = vpop.f32.mrb[11].mxu1 }
 0xf00   :  { %v741_v40 = vadd.f32 %v737_v28, %v1693_v53 }
 0xf01   :  { %1290 = vtanh.f32 %v740_v38 }
 0xf02   :  { %1292 = vtanh.f32 %v741_v40 }
 0xf0b   :  { %v1291_v41 = vpop.eup %1290 }
 0xf0c   :  { %v1293_v42 = vpop.eup %1292  ;;  %751 = vrot.lane.b32.xlu0 %v1291_v41, %s1440_s1  ;;  %v744_v43 = vadd.f32 1.0, %v1291_v41 }
 0xf0d   :  { %773 = vrot.lane.b32.xlu1 %v1293_v42, %s1440_s1  ;;  %v766_v44 = vadd.f32 1.0, %v1293_v42 }
 0xf0e   :  { %v745_v45 = vmul.f32 0.5, %v744_v43 }
 0xf0f   :  { %v767_v48 = vmul.f32 0.5, %v766_v44 }
 0xf10   :  { %v749_v55 = vmul.f32 %v747_v52, %v745_v45 }
 0xf11   :  { %v771_v57 = vmul.f32 %v769_v54, %v767_v48 }
 0xf7e   :  { %v752_v47 = vpop.permute.xlu0 %751 }
 0xf7f   :  { %v754_v49 = vmul.f32 %v752_v47, %v745_v45  ;;  %v774_v50 = vpop.permute.xlu1 %773 }
 0xf80   :  { %v776_v51 = vmul.f32 %v774_v50, %v767_v48 }
 0xf81   :  { %756 = vrot.lane.b32.xlu0 %v754_v49, %s1445_s2 }
 0xf82   :  { %778 = vrot.lane.b32.xlu1 %v776_v51, %s1445_s2 }
 0xff3   :  { %v757_v56 = vpop.permute.xlu0 %756 }
 0xff4   :  { %v759_v58 = vadd.f32 %v757_v56, %v749_v55  ;;  %v779_v59 = vpop.permute.xlu1 %778 }
 0xff5   :  { %v781_v60 = vadd.f32 %v779_v59, %v771_v57 }
 0xff6   :  { %1294 = vtanh.f32 %v759_v58  ;;  %v857_v21 = vrot.slane %v759_v58, 6 }
 0xff7   :  { %1296 = vtanh.f32 %v781_v60  ;;  %v879_v22 = vrot.slane %v781_v60, 6 }
0x1000   :  { %v1295_v61 = vpop.eup %1294 }
0x1001   :  { %v1297_v29 = vpop.eup %1296  ;;  %762 = vrot.lane.b32.xlu0 %v1295_v61, %s1440_s1 }
0x1002   :  { %784 = vrot.lane.b32.xlu1 %v1297_v29, %s1440_s1 }
0x1073   :  { %v763_v62 = vpop.permute.xlu0 %762 }
0x1074   :  { %v765_v20 = vmul.f32 %v763_v62, %v745_v45  ;;  %v785_v63 = vpop.permute.xlu1 %784 }
0x1075   :  { %v787_v0 = vmul.f32 %v785_v63, %v767_v48 }
0x1076   :  { %789 = vrot.lane.b32.xlu0 %v765_v20, %s1445_s2 }
0x1077   :  { %793 = vrot.lane.b32.xlu1 %v787_v0, %s1440_s1 }
0x10e8   :  { %v790_v2 = vpop.permute.xlu0 %789 }
0x10e9   :  { %v794_v3 = vpop.permute.xlu1 %793 }
0x10ea   :  { %v796_v4 = vsel %vm217_vm2, %v790_v2, %v794_v3 }
0x10eb   :  { %v797_v5 = vpack.c.bf16 %v796_v4, %v796_v4 }
0x10ed   :  { %v799_v6 = vrot.slane %v797_v5, 1 }
0x10ef   :  { %1197 = vmatmul.mubr.msk.bf16.vlgmr.msra.gmra.mrb[16].mxu0 %vm260_vm3, %v799_v6 }
0x10f0   :  { %1024 = vmatpush1.bf16.msra.mxu0 %v1576_v30  ;;  %1055 = vmatprep.mubr.bf16.mxu0 %v1444_v1 }
0x10f1   :  { %1025 = vmatprep.subr.bf16.mxu0 %v1578_v31 }
0x10f4   :  { %1026 = vmatpush1.bf16.msra.mxu0 %v1583_v32 }
0x10f5   :  { %1027 = vmatprep.subr.bf16.mxu0 %v1587_v33 }
0x10f8   :  { %1028 = vmatpush1.bf16.msra.mxu0 %v1591_v34 }
0x10f9   :  { %1029 = vmatprep.subr.bf16.mxu0 %v1595_v35 }
0x10fc   :  { %1030 = vmatpush1.bf16.msra.mxu0 %v1603_v37 }
0x11c2   :  { %v837_v7 = vpop.f32.mrb[16].mxu0 }
0x11c3   :  { %v846_v8 = vrot.slane %v837_v7, 4  ;;  %v839_v9 = vpop.f32.mrb[17].mxu0 }
0x11c4   :  { %v847_v11 = vrot.slane %v839_v9, 4  ;;  %v841_v12 = vpop.f32.mrb[18].mxu0 }
0x11c5   :  { %v850_v30 = vadd.f32 %v846_v8, %v1565_v19  ;;  %v842_v1 = vpop.f32.mrb[19].mxu0 }
0x11c6   :  { %v851_v31 = vadd.f32 %v847_v11, %v1693_v53 }
0x11c7   :  { %1298 = vtanh.f32 %v850_v30 }
0x11c8   :  { %1300 = vtanh.f32 %v851_v31 }
0x11d1   :  { %v1299_v32 = vpop.eup %1298 }
0x11d2   :  { %v1301_v33 = vpop.eup %1300  ;;  %861 = vrot.lane.b32.xlu0 %v1299_v32, %s1440_s1  ;;  %v854_v34 = vadd.f32 1.0, %v1299_v32 }
0x11d3   :  { %883 = vrot.lane.b32.xlu1 %v1301_v33, %s1440_s1  ;;  %v876_v35 = vadd.f32 1.0, %v1301_v33 }
0x11d4   :  { %v855_v37 = vmul.f32 0.5, %v854_v34 }
0x11d5   :  { %v877_v14 = vmul.f32 0.5, %v876_v35 }
0x11d6   :  { %v859_v23 = vmul.f32 %v857_v21, %v855_v37 }
0x11d7   :  { %v881_v25 = vmul.f32 %v879_v22, %v877_v14 }
0x1244   :  { %v862_v13 = vpop.permute.xlu0 %861 }
0x1245   :  { %v864_v15 = vmul.f32 %v862_v13, %v855_v37  ;;  %v884_v17 = vpop.permute.xlu1 %883 }
0x1246   :  { %v886_v18 = vmul.f32 %v884_v17, %v877_v14 }
0x1247   :  { %866 = vrot.lane.b32.xlu0 %v864_v15, %s1445_s2 }
0x1248   :  { %888 = vrot.lane.b32.xlu1 %v886_v18, %s1445_s2 }
0x12b9   :  { %v867_v24 = vpop.permute.xlu0 %866 }
0x12ba   :  { %v869_v26 = vadd.f32 %v867_v24, %v859_v23  ;;  %v889_v16 = vpop.permute.xlu1 %888 }
0x12bb   :  { %v891_v46 = vadd.f32 %v889_v16, %v881_v25 }
0x12bc   :  { %1302 = vtanh.f32 %v869_v26 }
0x12bd   :  { %1304 = vtanh.f32 %v891_v46 }
0x12c6   :  { %v1303_v27 = vpop.eup %1302 }
0x12c7   :  { %v1305_v28 = vpop.eup %1304  ;;  %872 = vrot.lane.b32.xlu0 %v1303_v27, %s1440_s1  ;;  %v1446_v27 = vmov 0.0  }
0x12c8   :  { %894 = vrot.lane.b32.xlu1 %v1305_v28, %s1440_s1  ;;  %1207 = vmatprep.subr.bf16.mxu1 %v1446_v27 }
0x1339   :  { %v873_v36 = vpop.permute.xlu0 %872 }
0x133a   :  { %v875_v38 = vmul.f32 %v873_v36, %v855_v37  ;;  %v895_v39 = vpop.permute.xlu1 %894 }
0x133b   :  { %v897_v40 = vmul.f32 %v895_v39, %v877_v14 }
0x133c   :  { %899 = vrot.lane.b32.xlu0 %v875_v38, %s1445_s2 }
0x133d   :  { %903 = vrot.lane.b32.xlu1 %v897_v40, %s1440_s1 }
0x13ae   :  { %v900_v41 = vpop.permute.xlu0 %899 }
0x13af   :  { %v904_v42 = vpop.permute.xlu1 %903 }
0x13b0   :  { %v906_v43 = vsel %vm217_vm2, %v900_v41, %v904_v42  ;;  %v1200_v41 = vld [vmem:[%s1785_s5] ss:$0 sm:$0xff] }
0x13b1   :  { %v907_v44 = vpack.c.bf16 %v906_v43, %v906_v43 }
0x13b3   :  { %v909_v45 = vrot.slane %v907_v44, 2 }
0x13b5   :  { %1198 = vmatmul.mubr.msk.bf16.vlgmr.msra.gmra.mrb[12].mxu1 %vm260_vm3, %v909_v45 }
0x13b6   :  { %1211 = vmatprep.mubr.msk.bf16.mxu1 %vm1447_vm4, %v1446_v27 }
0x1488   :  { %v947_v47 = vpop.f32.mrb[12].mxu1 }
0x1489   :  { %v956_v48 = vrot.slane %v947_v47, 2  ;;  %v949_v49 = vpop.f32.mrb[13].mxu1 }
0x148a   :  { %v957_v50 = vrot.slane %v949_v49, 2  ;;  %v951_v51 = vpop.f32.mrb[14].mxu1 }
0x148b   :  { %v960_v52 = vadd.f32 %v956_v48, %v1565_v19  ;;  %v952_v54 = vpop.f32.mrb[15].mxu1  ;;  %v967_v19 = vrot.slane %v869_v26, 6 }
0x148c   :  { %v961_v55 = vadd.f32 %v957_v50, %v1693_v53  ;;  %v989_v53 = vrot.slane %v891_v46, 6  ;;  %v1252_v46 = vld [vmem:[#allocation8] sm:$0xff]  }
0x148d   :  { %1306 = vtanh.f32 %v960_v52  ;;  %1208 = vmatpush3.bf16.msra.mxu1 %v1252_v46 }
0x148e   :  { %1308 = vtanh.f32 %v961_v55  ;;  %1209 = vmatprep.subr.bf16.mxu1 %v1446_v27 }
0x1497   :  { %v1307_v56 = vpop.eup %1306 }
0x1498   :  { %v1309_v57 = vpop.eup %1308  ;;  %971 = vrot.lane.b32.xlu0 %v1307_v56, %s1440_s1  ;;  %v964_v58 = vadd.f32 1.0, %v1307_v56 }
0x1499   :  { %993 = vrot.lane.b32.xlu1 %v1309_v57, %s1440_s1  ;;  %v986_v59 = vadd.f32 1.0, %v1309_v57 }
0x149a   :  { %v965_v60 = vmul.f32 0.5, %v964_v58 }
0x149b   :  { %v987_v29 = vmul.f32 0.5, %v986_v59 }
0x149c   :  { %v969_v0 = vmul.f32 %v967_v19, %v965_v60 }
0x149d   :  { %v991_v3 = vmul.f32 %v989_v53, %v987_v29 }
0x150a   :  { %v972_v61 = vpop.permute.xlu0 %971 }
0x150b   :  { %v974_v62 = vmul.f32 %v972_v61, %v965_v60  ;;  %v994_v20 = vpop.permute.xlu1 %993 }
0x150c   :  { %v996_v63 = vmul.f32 %v994_v20, %v987_v29 }
0x150d   :  { %976 = vrot.lane.b32.xlu0 %v974_v62, %s1445_s2 }
0x150e   :  { %998 = vrot.lane.b32.xlu1 %v996_v63, %s1445_s2 }
0x157f   :  { %v977_v2 = vpop.permute.xlu0 %976 }
0x1580   :  { %v979_v4 = vadd.f32 %v977_v2, %v969_v0  ;;  %v999_v5 = vpop.permute.xlu1 %998 }
0x1581   :  { %v1001_v6 = vadd.f32 %v999_v5, %v991_v3 }
0x1582   :  { %1310 = vtanh.f32 %v979_v4 }
0x1583   :  { %1312 = vtanh.f32 %v1001_v6  ;;  %v1068_v24 = vrot.slane %v1001_v6, 6 }
0x158c   :  { %v1311_v7 = vpop.eup %1310 }
0x158d   :  { %v1313_v8 = vpop.eup %1312  ;;  %982 = vrot.lane.b32.xlu0 %v1311_v7, %s1440_s1 }
0x158e   :  { %1004 = vrot.lane.b32.xlu1 %v1313_v8, %s1440_s1 }
0x15ff   :  { %v983_v9 = vpop.permute.xlu0 %982 }
0x1600   :  { %v985_v11 = vmul.f32 %v983_v9, %v965_v60  ;;  %v1005_v12 = vpop.permute.xlu1 %1004 }
0x1601   :  { %v1007_v30 = vmul.f32 %v1005_v12, %v987_v29 }
0x1602   :  { %1009 = vrot.lane.b32.xlu0 %v985_v11, %s1445_s2 }
0x1603   :  { %1013 = vrot.lane.b32.xlu1 %v1007_v30, %s1440_s1 }
0x1674   :  { %v1010_v1 = vpop.permute.xlu0 %1009 }
0x1675   :  { %v1014_v31 = vpop.permute.xlu1 %1013 }
0x1676   :  { %v1016_v32 = vsel %vm217_vm2, %v1010_v1, %v1014_v31 }
0x1677   :  { %v1017_v33 = vpack.c.bf16 %v1016_v32, %v1016_v32 }
0x1679   :  { %v1019_v34 = vrot.slane %v1017_v33, 3 }
0x167b   :  { %1199 = vmatmul.mubr.msk.bf16.vlgmr.msra.gmra.mrb[4].mxu0 %vm260_vm3, %v1019_v34 }
0x174e   :  { %v1057_v35 = vpop.f32.mrb[4].mxu0 }
0x174f   :  { %v1058_v37 = vpop.f32.mrb[5].mxu0 }
0x1750   :  { %v1215_v13 = vadd.f32 %v1058_v37, %v1556_v10  ;;  %v1060_v14 = vpop.f32.mrb[6].mxu0  ;;  %v1253_v10 = vld [vmem:[#allocation8 + $0x8] sm:$0xff]  }
0x1751   :  { %v1061_v15 = vpop.f32.mrb[7].mxu0  ;;  %1210 = vmatpush3.bf16.msra.mxu1 %v1253_v10 }
0x1752   :  { %1314 = vtanh.f32 %v1215_v13 }
0x175c   :  { %v1315_v17 = vpop.eup %1314 }
0x175d   :  { %1072 = vrot.lane.b32.xlu0 %v1315_v17, %s1440_s1  ;;  %v1065_v18 = vadd.f32 1.0, %v1315_v17 }
0x175f   :  { %v1066_v21 = vmul.f32 0.5, %v1065_v18 }
0x1761   :  { %v1070_v25 = vmul.f32 %v1068_v24, %v1066_v21 }
0x17cf   :  { %v1073_v22 = vpop.permute.xlu0 %1072 }
0x17d0   :  { %v1075_v23 = vmul.f32 %v1073_v22, %v1066_v21 }
0x17d2   :  { %1077 = vrot.lane.b32.xlu1 %v1075_v23, %s1445_s2 }
0x1844   :  { %v1078_v26 = vpop.permute.xlu1 %1077 }
0x1845   :  { %v1080_v16 = vadd.f32 %v1078_v26, %v1070_v25 }
0x1847   :  { %1316 = vtanh.f32 %v1080_v16 }
0x1851   :  { %v1317_v28 = vpop.eup %1316 }
0x1852   :  { %1083 = vrot.lane.b32.xlu0 %v1317_v28, %s1440_s1  ;;  %s1406_s1 = scalar_lea.vmem %s1165_s26, 32 }
0x1853   :  { %p1407_p4 = scmp.ne.s32.totalorder %s1165_s26, %s1406_s1  ;;  %p1412_p6 = scmp.lt.s32.totalorder %s1406_s1, %s1406_s1 }
0x1855   :  { %p1413_p7 = por %p1412_p6, %p1411_p5 }
0x1857   :  { %p1414_p8 = pnand %p1413_p7, %p1407_p4 }
0x18c4   :  { %v1084_v36 = vpop.permute.xlu0 %1083 }
0x18c5   :  { %v1086_v38 = vmul.f32 %v1084_v36, %v1066_v21 }
0x18c7   :  { %v1087_v39 = vpack.c.bf16 %v1086_v38, %v1086_v38 }
0x18c9   :  { %1100 = vrot.lane.b32.xlu1 %v1087_v39, %s1445_s2 }
0x193b   :  { %v1101_v40 = vpop.permute.xlu1 %1100 }
0x193c   :  { %1212 = vmatmul.mubr.msk.bf16.vlgmr.msra.gmra.mrb[16].mxu1 %vm217_vm2, %v1101_v40 }
0x1a0f   :  { %v1151_v42 = vpop.f32.mrb[16].mxu1 }
0x1a10   :  { %v1152_v43 = vadd.f32 %v1200_v41, %v1151_v42  ;;  %v1213_v44 = vpop.f32.mrb[17].mxu1 }
0x1a11   :  { %v1154_v45 = vpop.f32.mrb[18].mxu1 }
0x1a12   :  { %1157 = vst [vmem:[#allocation10] sm:$0x3] %v1152_v43  ;;  %v1214_v47 = vpop.f32.mrb[19].mxu1 }
0x1a13   :  { %1417 = shalt.err (!%p1414_p8)
}
0x1a14   :  { %s1418_s5 = scalar_lea.hbm %s1786_s6, 32 }
0x1a15   :  { %p1419_p9 = scmp.ne.s32.totalorder %s1786_s6, %s1418_s5  ;;  %p1422_p10 = scmp.lt.u32.totalorder %s1418_s5, %s1786_s6 }
0x1a17   :  { %p1424_p11 = pnand %p1422_p10, %p1419_p9 }
0x1a19   :  { %1427 = shalt.err (!%p1424_p11)
}
0x1a1a   :  { %1167 = dma.vmem_to_hbm [thread:$0]  %s1165_s26, 32, %s1786_s6, [#allocation4]  }
0x1a1b   :  { %1434 = dma.done.wait [#allocation4], 32  }
0x1a1c   :  { %1435 = vsyncadd [#allocation4], 4294967264 }
0x1a1d   :  { %1171 = vsyncpa [#allocation3], 1 }
0x1a1e   :  { %1172 = vsyncpa [#allocation6], 1 }
0x1a1f   :  { %1173 = vsyncpa [#allocation9], 1 }
0x1a20   :  { %1174 = vsyncpa [#allocation4], 1 }

</bundles_post_ra>
